<compile_context>
chip_gen: v6e
topology: v6e:2x2x1
jax: 0.10.0
libtpu: 0.0.40
codegen_flags: <defaults>
</compile_context>

<pallas_src>
import numpy as np
import jax
import jax.numpy as jnp
from jax.experimental import pallas as pl
from jax.experimental.pallas import tpu as pltpu


# ----------------------------- small helpers --------------------------------
def _make_divisible(v, divisor=8, min_value=None):
    if min_value is None:
        min_value = divisor
    new_v = max(min_value, int(v + divisor / 2) // divisor * divisor)
    if new_v < 0.9 * v:
        new_v += divisor
    return new_v


def _adjust_channels(channels, ratio):
    return _make_divisible(channels * ratio, 8)


def _hardswish(x):
    return x * jnp.clip(x + 3.0, 0.0, 6.0) * (1.0 / 6.0)


def _hardsigmoid(x):
    return jnp.clip(x + 3.0, 0.0, 6.0) * (1.0 / 6.0)


def _round_up(x, m):
    return ((x + m - 1) // m) * m


def _pick_tile(n, cap):
    # largest divisor of n that is <= cap
    # TODO(synk): remainder handling uses the divisor fallback rather than a
    # masked partial last tile.
    for c in range(min(cap, n), 0, -1):
        if n % c == 0:
            return c
    return 1


def _vmem_limit_bytes():
    # per-chip budget: ~3/4 of physical VMEM, capped at 100 MiB (v5e/v6e have
    # 128 MiB; v7x only 64 MiB -> ~48 MiB budget, leaving compiler headroom).
    try:
        cap = int(pltpu.get_tpu_info().vmem_capacity_bytes)
    except Exception:
        cap = 64 * 1024 * 1024
    return int(min(cap * 3 // 4, 100 * 1024 * 1024))


# --------------- fused expand + depthwise + SE + proj kernel ----------------
def _make_fused_kernel(*, K, S, PAD, TH, TH_IN, WO, HO, WPS, W, H, CIN, CMID,
                       T, USE_RES):
    # TH_IN = S * (TH + (K - 1) // S): padded-input rows loaded per output-row tile.
    NB = TH_IN // S

    def kernel(xp_ref, wexp_ref, wdw_ref, bdw_ref,
               wse1_ref, bse1_ref, wse2_ref, bse2_ref,
               wpj_ref, bpj_ref,
               o_ref, dcache_ref):
        t = pl.program_id(1)                                   # output-row tile index

        # ---- fused 1x1 expand (BN scale folded into weights; bias carried by the
        #      ones-channel row so padded positions stay exactly 0) + hardswish ----
        row0 = pl.multiple_of(t * (TH * S), TH * S)
        xblk = xp_ref[0, pl.ds(row0, TH_IN)]                   # (TH_IN, WP_ext, CIN+1)
        wp_ext = xblk.shape[1]
        xm = xblk.reshape(TH_IN * wp_ext, CIN + 1)             # WP_ext % 8 == 0 -> free
        e = _hardswish(jnp.dot(xm, wexp_ref[...],
                               preferred_element_type=jnp.float32))
        # rows grouped by (block, h-phase); cols already grouped by w-phase (wrapper)
        er = e.reshape(NB, S, wp_ext, CMID)

        # ---- depthwise KxK stride-S: contiguous taps, col slice hoisted per kw ----
        wdw = wdw_ref[...]                                     # (K*K, CMID), loaded once
        acc = None
        for kw in range(K):
            qw, pw = kw // S, kw % S
            c0 = pw * WPS + qw
            ekw = er[:, :, c0:c0 + WO, :]                      # (NB, S, WO, CMID)
            for kh in range(K):
                qh, rh = kh // S, kh % S
                tap = ekw[qh:qh + TH, rh]                      # (TH, WO, CMID)
                term = tap * wdw[kh * K + kw: kh * K + kw + 1, :]
                acc = term if acc is None else acc + term      # first tap inits acc
        d = _hardswish(acc + bdw_ref[...])                     # (TH, WO, CMID)
        d2 = d.reshape(TH * WO, CMID)                          # free when WO % 8 == 0

        # ---- cache the depthwise output (no phase-1 recompute) ----
        r0 = pl.multiple_of(t * (TH * WO), TH * WO)
        dcache_ref[pl.ds(r0, TH * WO), :] = d2

        # ---- last tile: SE gate, gated projection (+ residual), single write ----
        # output block index is constant across t for a given n (standard
        # accumulator pattern), so the block is flushed exactly once per image
        # after it has been written here.
        @pl.when(t == T - 1)
        def _():
            dall = dcache_ref[...]                             # (HO*WO, CMID)
            pooled = jnp.sum(dall, axis=0, keepdims=True) * (1.0 / float(HO * WO))
            s1 = jnp.dot(pooled, wse1_ref[...], preferred_element_type=jnp.float32)
            s1 = jnp.maximum(s1 + bse1_ref[...], 0.0)          # (1, CSQ)
            g = jnp.dot(s1, wse2_ref[...], preferred_element_type=jnp.float32)
            gate = _hardsigmoid(g + bse2_ref[...])             # (1, CMID)

            dg = dall * gate
            o = jnp.dot(dg, wpj_ref[...], preferred_element_type=jnp.float32)
            o = o + bpj_ref[...]                               # (HO*WO, COUT)
            if USE_RES:
                # stride == 1 here; residual rows live inside the resident padded-x
                # block -> sliced in place, no extra DMA (drop the ones channel).
                xres = xp_ref[0, PAD:PAD + H]                  # (H, WP_ext, CIN+1)
                xres = xres[:, PAD:PAD + W, :CIN]              # (H, W, CIN)
                o = o + xres.reshape(H * W, CIN).astype(jnp.float32)
            o_ref[0] = o.astype(o_ref.dtype)

    return kernel


# ----------------------------- module wrapper --------------------------------
class DepthwiseOperationV2Pallas:
    def __init__(self, expand_ratio, in_chn, out_chn, kernel_size, stride, key,
                 max_tile_rows=32):
        assert stride in (1, 2)
        self.in_chn, self.out_chn = in_chn, out_chn
        self.kernel_size, self.stride = kernel_size, stride
        self.mid_chn = _adjust_channels(in_chn, expand_ratio)
        self.sq_chn = _make_divisible(self.mid_chn // 4, 8)
        self.use_res = (in_chn == out_chn) and (stride == 1)
        self.max_tile_rows = max_tile_rows

        ks_ = jax.random.split(key, 13)
        mid, sq, k = self.mid_chn, self.sq_chn, kernel_size

        def rnd(i, shape, scale):
            return scale * jax.random.normal(ks_[i], shape, jnp.float32)

        self.params = dict(
            w_exp=rnd(0, (in_chn, mid), 1.0 / np.sqrt(in_chn)),
            s_exp=1.0 + rnd(1, (1, mid), 0.1),
            b_exp=rnd(2, (1, mid), 0.1),
            w_dw=rnd(3, (k * k, mid), 1.0 / k),
            s_dw=1.0 + rnd(4, (1, mid), 0.1),
            b_dw=rnd(5, (1, mid), 0.1),
            w_se1=rnd(6, (mid, sq), 1.0 / np.sqrt(mid)),
            b_se1=rnd(7, (1, sq), 0.1),
            w_se2=rnd(8, (sq, mid), 1.0 / np.sqrt(sq)),
            b_se2=rnd(9, (1, mid), 0.1),
            w_proj=rnd(10, (mid, out_chn), 1.0 / np.sqrt(mid)),
            s_proj=1.0 + rnd(11, (1, out_chn), 0.1),
            b_proj=rnd(12, (1, out_chn), 0.1),
        )

    def __call__(self, x_nchw):
        p = self.params
        k, s = self.kernel_size, self.stride
        pad = k // 2
        cmid, cout = self.mid_chn, self.out_chn

        x = jnp.transpose(x_nchw, (0, 2, 3, 1))                     # NCHW -> NHWC
        N, H, W, cin = x.shape
        Ho = (H + 2 * pad - k) // s + 1
        Wo = (W + 2 * pad - k) // s + 1
        Wp_ext = _round_up(W + 2 * pad, 8 * s)
        WPS = Wp_ext // s

        # row-tile selection: largest divisor of Ho whose per-tile temporaries
        # (expanded rows + depthwise acc/out) stay inside a modest VMEM budget.
        bytes_per_out_row = 4 * cmid * (s * Wp_ext + 2 * Wo)
        cap = max(1, min(self.max_tile_rows, (12 << 20) // max(bytes_per_out_row, 1)))
        TH = _pick_tile(Ho, cap)
        T = Ho // TH
        TH_IN = s * (TH + (k - 1) // s)
        Hp_ext = max(H + 2 * pad, (T - 1) * s * TH + TH_IN)

        # ones-channel trick: the appended channel is 1 inside the image and 0 in
        # the zero padding; the matching extra w_exp row equals the folded-BN bias,
        # so padded positions of the expanded activation are exactly 0 (correct
        # 'same' padding) and the bias-add rides the MXU matmul for free.
        ones = jnp.ones((N, H, W, 1), x.dtype)
        xe = jnp.concatenate([x, ones], axis=-1)
        xp = jnp.pad(xe, ((0, 0), (pad, Hp_ext - H - pad),
                          (pad, Wp_ext - W - pad), (0, 0)))
        if s > 1:
            # de-interleave W phases so depthwise taps are contiguous in the kernel
            xp = jnp.concatenate([xp[:, :, phs::s, :] for phs in range(s)], axis=2)

        # fold BN scales into weights (only biases stay in-kernel)
        w_exp_eff = jnp.concatenate([p["w_exp"] * p["s_exp"], p["b_exp"]], axis=0)
        w_dw_eff = p["w_dw"] * p["s_dw"]
        w_proj_eff = p["w_proj"] * p["s_proj"]

        kernel = _make_fused_kernel(K=k, S=s, PAD=pad, TH=TH, TH_IN=TH_IN,
                                    WO=Wo, HO=Ho, WPS=WPS, W=W, H=H,
                                    CIN=cin, CMID=cmid, T=T, USE_RES=self.use_res)

        def wspec(a):
            return pl.BlockSpec(a.shape, lambda n, t: (0, 0))

        params_list = [w_exp_eff, w_dw_eff, p["b_dw"],
                       p["w_se1"], p["b_se1"], p["w_se2"], p["b_se2"],
                       w_proj_eff, p["b_proj"]]
        flops = int(2 * N * (Hp_ext * Wp_ext * (cin + 1) * cmid      # expand (once)
                             + Ho * Wo * cmid * k * k                # depthwise
                             + Ho * Wo * cmid * cout                 # projection
                             + 2 * cmid * self.sq_chn))              # SE MLP
        bytes_accessed = int(4 * (xp.size + N * Ho * Wo * cout
                                  + sum(v.size for v in params_list)))

        out = pl.pallas_call(
            kernel,
            out_shape=jax.ShapeDtypeStruct((N, Ho * Wo, cout), x.dtype),
            grid_spec=pltpu.PrefetchScalarGridSpec(
                num_scalar_prefetch=0,
                grid=(N, T),                                         # batch, row-tile
                in_specs=[
                    # padded input: resident across the row tiles of a given image
                    pl.BlockSpec((1, Hp_ext, Wp_ext, cin + 1),
                                 lambda n, t: (n, 0, 0, 0)),
                    wspec(w_exp_eff), wspec(w_dw_eff), wspec(p["b_dw"]),
                    wspec(p["w_se1"]), wspec(p["b_se1"]),
                    wspec(p["w_se2"]), wspec(p["b_se2"]),
                    wspec(w_proj_eff), wspec(p["b_proj"]),
                ],
                # output block index is constant across t -> written once at t==T-1,
                # flushed once per image (accumulator pattern).
                out_specs=pl.BlockSpec((1, Ho * Wo, cout),
                                       lambda n, t: (n, 0, 0)),
                scratch_shapes=[pltpu.VMEM((Ho * Wo, cmid), jnp.float32)],  # d cache
            ),
            compiler_params=pltpu.CompilerParams(
                dimension_semantics=("parallel", "arbitrary"),
                vmem_limit_bytes=_vmem_limit_bytes()),
            cost_estimate=pl.CostEstimate(flops=flops, transcendentals=0,
                                          bytes_accessed=bytes_accessed),
        )(xp, w_exp_eff, w_dw_eff, p["b_dw"],
          p["w_se1"], p["b_se1"], p["w_se2"], p["b_se2"],
          w_proj_eff, p["b_proj"])

        out = out.reshape(N, Ho, Wo, cout)                           # free in XLA
        return jnp.transpose(out, (0, 3, 1, 2))                      # NHWC -> NCHW


# -------------------------- pure-JAX reference --------------------------------
def reference_forward(x_nchw, module):
    p = module.params
    k, stride = module.kernel_size, module.stride
    x = jnp.transpose(x_nchw, (0, 2, 3, 1)).astype(jnp.float32)
    N, H, W, _ = x.shape
    h = _hardswish(jnp.einsum("nhwc,cd->nhwd", x, p["w_exp"]) * p["s_exp"] + p["b_exp"])
    pad = k // 2
    hp = jnp.pad(h, ((0, 0), (pad, pad), (pad, pad), (0, 0)))
    Ho = (H + 2 * pad - k) // stride + 1
    Wo = (W + 2 * pad - k) // stride + 1
    acc = jnp.zeros((N, Ho, Wo, module.mid_chn), jnp.float32)
    for kh in range(k):
        for kw in range(k):
            tap = hp[:, kh:kh + stride * (Ho - 1) + 1:stride,
                     kw:kw + stride * (Wo - 1) + 1:stride, :]
            acc = acc + tap * p["w_dw"][kh * k + kw]
    d = _hardswish(acc * p["s_dw"] + p["b_dw"])
    pooled = jnp.mean(d, axis=(1, 2), keepdims=True)
    s1 = jnp.maximum(jnp.einsum("nijc,cd->nijd", pooled, p["w_se1"]) + p["b_se1"], 0.0)
    gate = _hardsigmoid(jnp.einsum("nijd,dc->nijc", s1, p["w_se2"]) + p["b_se2"])
    d = d * gate
    o = jnp.einsum("nhwc,cd->nhwd", d, p["w_proj"]) * p["s_proj"] + p["b_proj"]
    if module.use_res:
        o = o + x
    return jnp.transpose(o, (0, 3, 1, 2))


# ------------------------------------ main ------------------------------------
if __name__ == "__main__":
    root = jax.random.PRNGKey(0)
    configs = [
        # (expand_ratio, in_chn, out_chn, kernel_size, stride, N, H, W, max_tile_rows)
        (4, 8, 8, 3, 1, 2, 16, 16, 4),     # residual path, multi-tile (T=4)
        (4, 8, 16, 3, 2, 2, 16, 16, 32),   # stride-2, channel-changing path
        (4, 8, 8, 5, 1, 1, 16, 16, 32),    # 5x5 depthwise, residual, single tile
    ]
    for cfg_i, (exp_r, ci, co, ksz, st, N, H, W, mtr) in enumerate(configs):
        k_x, k_p = jax.random.split(jax.random.fold_in(root, cfg_i))
        x = jax.random.normal(k_x, (N, ci, H, W), jnp.float32)
        mod = DepthwiseOperationV2Pallas(exp_r, ci, co, ksz, st, k_p,
                                         max_tile_rows=mtr)

        out = jax.block_until_ready(mod(x))
        ref = jax.block_until_ready(reference_forward(x, mod))

        pad = ksz // 2
        Ho = (H + 2 * pad - ksz) // st + 1
        Wo = (W + 2 * pad - ksz) // st + 1
        assert out.shape == (N, co, Ho, Wo), out.shape
        max_err = float(jnp.max(jnp.abs(out - ref)))
        assert np.allclose(np.asarray(out), np.asarray(ref),
                           atol=3e-3, rtol=3e-3), (cfg_i, max_err)
    print("KERNEL_OK")
</pallas_src>

<mosaic_0001>
module attributes {stable_mosaic.version = 11 : i64} {
  func.func @kernel(%arg0: i32, %arg1: i32, %arg2: memref<1x18x24x9xf32, #tpu.memory_space<vmem>>, %arg3: memref<9x32xf32, #tpu.memory_space<vmem>>, %arg4: memref<9x32xf32, #tpu.memory_space<vmem>>, %arg5: memref<1x32xf32, #tpu.memory_space<vmem>>, %arg6: memref<32x8xf32, #tpu.memory_space<vmem>>, %arg7: memref<1x8xf32, #tpu.memory_space<vmem>>, %arg8: memref<8x32xf32, #tpu.memory_space<vmem>>, %arg9: memref<1x32xf32, #tpu.memory_space<vmem>>, %arg10: memref<32x8xf32, #tpu.memory_space<vmem>>, %arg11: memref<1x8xf32, #tpu.memory_space<vmem>>, %arg12: memref<1x256x8xf32, #tpu.memory_space<vmem>>, %arg13: memref<256x32xf32, #tpu.memory_space<vmem>>) attributes {dimension_semantics = [#tpu.dimension_semantics<parallel>, #tpu.dimension_semantics<arbitrary>], iteration_bounds = array<i64: 2, 4>, scalar_prefetch = 0 : i64, scratch_operands = 1 : i64, tpu.core_type = #tpu.core_type<tc>, window_params = [{transform_indices = @transform_0, window_bounds = array<i64: 1, 18, 24, 9>}, {pipeline_mode = #tpu.pipeline_mode<synchronous>, transform_indices = @transform_1, window_bounds = array<i64: 9, 32>}, {pipeline_mode = #tpu.pipeline_mode<synchronous>, transform_indices = @transform_2, window_bounds = array<i64: 9, 32>}, {pipeline_mode = #tpu.pipeline_mode<synchronous>, transform_indices = @transform_3, window_bounds = array<i64: 1, 32>}, {pipeline_mode = #tpu.pipeline_mode<synchronous>, transform_indices = @transform_4, window_bounds = array<i64: 32, 8>}, {pipeline_mode = #tpu.pipeline_mode<synchronous>, transform_indices = @transform_5, window_bounds = array<i64: 1, 8>}, {pipeline_mode = #tpu.pipeline_mode<synchronous>, transform_indices = @transform_6, window_bounds = array<i64: 8, 32>}, {pipeline_mode = #tpu.pipeline_mode<synchronous>, transform_indices = @transform_7, window_bounds = array<i64: 1, 32>}, {pipeline_mode = #tpu.pipeline_mode<synchronous>, transform_indices = @transform_8, window_bounds = array<i64: 32, 8>}, {pipeline_mode = #tpu.pipeline_mode<synchronous>, transform_indices = @transform_9, window_bounds = array<i64: 1, 8>}, {transform_indices = @transform_10, window_bounds = array<i64: 1, 256, 8>}]} {
    %c4_i32 = arith.constant 4 : i32
    %0 = arith.muli %arg1, %c4_i32 : i32
    %1 = tpu.assume_multiple %0, 4 : i32
    %c0 = arith.constant 0 : index
    %2 = arith.index_cast %1 : i32 to index
    %c0_0 = arith.constant 0 : index
    %c0_1 = arith.constant 0 : index
    %3 = vector.load %arg2[%c0, %2, %c0_0, %c0_1] : memref<1x18x24x9xf32, #tpu.memory_space<vmem>>, vector<1x6x24x9xf32>
    %4 = vector.shape_cast %3 : vector<1x6x24x9xf32> to vector<6x24x9xf32>
    %5 = vector.shape_cast %4 : vector<6x24x9xf32> to vector<144x9xf32>
    %c0_2 = arith.constant 0 : index
    %c0_3 = arith.constant 0 : index
    %6 = vector.load %arg3[%c0_2, %c0_3] : memref<9x32xf32, #tpu.memory_space<vmem>>, vector<9x32xf32>
    %cst = arith.constant dense<0.000000e+00> : vector<144x32xf32>
    %7 = tpu.matmul %5, %6, %cst {dimension_numbers = #tpu.dot_dimension_numbers<[1], [0], [0], [1], [0, 0, 1, 1], [], []>} : vector<144x9xf32>, vector<9x32xf32>, vector<144x32xf32> -> vector<144x32xf32>
    %cst_4 = arith.constant 3.000000e+00 : f32
    %8 = vector.broadcast %cst_4 : f32 to vector<144x32xf32>
    %9 = arith.addf %7, %8 : vector<144x32xf32>
    %cst_5 = arith.constant 0.000000e+00 : f32
    %cst_6 = arith.constant 6.000000e+00 : f32
    %10 = vector.broadcast %cst_5 : f32 to vector<144x32xf32>
    %11 = arith.maximumf %10, %9 : vector<144x32xf32>
    %12 = vector.broadcast %cst_6 : f32 to vector<144x32xf32>
    %13 = arith.minimumf %12, %11 : vector<144x32xf32>
    %14 = arith.mulf %7, %13 : vector<144x32xf32>
    %cst_7 = arith.constant 0.166666672 : f32
    %15 = vector.broadcast %cst_7 : f32 to vector<144x32xf32>
    %16 = arith.mulf %14, %15 : vector<144x32xf32>
    %17 = vector.shape_cast %16 : vector<144x32xf32> to vector<6x1x24x32xf32>
    %c0_8 = arith.constant 0 : index
    %c0_9 = arith.constant 0 : index
    %18 = vector.load %arg4[%c0_8, %c0_9] : memref<9x32xf32, #tpu.memory_space<vmem>>, vector<9x32xf32>
    %19 = vector.extract_strided_slice %17 {offsets = [0, 0, 0, 0], sizes = [6, 1, 16, 32], strides = [1, 1, 1, 1]} : vector<6x1x24x32xf32> to vector<6x1x16x32xf32>
    %20 = vector.extract_strided_slice %19 {offsets = [0, 0, 0, 0], sizes = [4, 1, 16, 32], strides = [1, 1, 1, 1]} : vector<6x1x16x32xf32> to vector<4x1x16x32xf32>
    %21 = vector.shape_cast %20 : vector<4x1x16x32xf32> to vector<4x16x32xf32>
    %22 = vector.extract_strided_slice %18 {offsets = [0, 0], sizes = [1, 32], strides = [1, 1]} : vector<9x32xf32> to vector<1x32xf32>
    %23 = vector.shape_cast %22 : vector<1x32xf32> to vector<1x1x32xf32>
    %24 = vector.broadcast %23 : vector<1x1x32xf32> to vector<4x16x32xf32>
    %25 = arith.mulf %21, %24 : vector<4x16x32xf32>
    %26 = vector.extract_strided_slice %19 {offsets = [1, 0, 0, 0], sizes = [4, 1, 16, 32], strides = [1, 1, 1, 1]} : vector<6x1x16x32xf32> to vector<4x1x16x32xf32>
    %27 = vector.shape_cast %26 : vector<4x1x16x32xf32> to vector<4x16x32xf32>
    %28 = vector.extract_strided_slice %18 {offsets = [3, 0], sizes = [1, 32], strides = [1, 1]} : vector<9x32xf32> to vector<1x32xf32>
    %29 = vector.shape_cast %28 : vector<1x32xf32> to vector<1x1x32xf32>
    %30 = vector.broadcast %29 : vector<1x1x32xf32> to vector<4x16x32xf32>
    %31 = arith.mulf %27, %30 : vector<4x16x32xf32>
    %32 = arith.addf %25, %31 : vector<4x16x32xf32>
    %33 = vector.extract_strided_slice %19 {offsets = [2, 0, 0, 0], sizes = [4, 1, 16, 32], strides = [1, 1, 1, 1]} : vector<6x1x16x32xf32> to vector<4x1x16x32xf32>
    %34 = vector.shape_cast %33 : vector<4x1x16x32xf32> to vector<4x16x32xf32>
    %35 = vector.extract_strided_slice %18 {offsets = [6, 0], sizes = [1, 32], strides = [1, 1]} : vector<9x32xf32> to vector<1x32xf32>
    %36 = vector.shape_cast %35 : vector<1x32xf32> to vector<1x1x32xf32>
    %37 = vector.broadcast %36 : vector<1x1x32xf32> to vector<4x16x32xf32>
    %38 = arith.mulf %34, %37 : vector<4x16x32xf32>
    %39 = arith.addf %32, %38 : vector<4x16x32xf32>
    %40 = vector.extract_strided_slice %17 {offsets = [0, 0, 1, 0], sizes = [6, 1, 16, 32], strides = [1, 1, 1, 1]} : vector<6x1x24x32xf32> to vector<6x1x16x32xf32>
    %41 = vector.extract_strided_slice %40 {offsets = [0, 0, 0, 0], sizes = [4, 1, 16, 32], strides = [1, 1, 1, 1]} : vector<6x1x16x32xf32> to vector<4x1x16x32xf32>
    %42 = vector.shape_cast %41 : vector<4x1x16x32xf32> to vector<4x16x32xf32>
    %43 = vector.extract_strided_slice %18 {offsets = [1, 0], sizes = [1, 32], strides = [1, 1]} : vector<9x32xf32> to vector<1x32xf32>
    %44 = vector.shape_cast %43 : vector<1x32xf32> to vector<1x1x32xf32>
    %45 = vector.broadcast %44 : vector<1x1x32xf32> to vector<4x16x32xf32>
    %46 = arith.mulf %42, %45 : vector<4x16x32xf32>
    %47 = arith.addf %39, %46 : vector<4x16x32xf32>
    %48 = vector.extract_strided_slice %40 {offsets = [1, 0, 0, 0], sizes = [4, 1, 16, 32], strides = [1, 1, 1, 1]} : vector<6x1x16x32xf32> to vector<4x1x16x32xf32>
    %49 = vector.shape_cast %48 : vector<4x1x16x32xf32> to vector<4x16x32xf32>
    %50 = vector.extract_strided_slice %18 {offsets = [4, 0], sizes = [1, 32], strides = [1, 1]} : vector<9x32xf32> to vector<1x32xf32>
    %51 = vector.shape_cast %50 : vector<1x32xf32> to vector<1x1x32xf32>
    %52 = vector.broadcast %51 : vector<1x1x32xf32> to vector<4x16x32xf32>
    %53 = arith.mulf %49, %52 : vector<4x16x32xf32>
    %54 = arith.addf %47, %53 : vector<4x16x32xf32>
    %55 = vector.extract_strided_slice %40 {offsets = [2, 0, 0, 0], sizes = [4, 1, 16, 32], strides = [1, 1, 1, 1]} : vector<6x1x16x32xf32> to vector<4x1x16x32xf32>
    %56 = vector.shape_cast %55 : vector<4x1x16x32xf32> to vector<4x16x32xf32>
    %57 = vector.extract_strided_slice %18 {offsets = [7, 0], sizes = [1, 32], strides = [1, 1]} : vector<9x32xf32> to vector<1x32xf32>
    %58 = vector.shape_cast %57 : vector<1x32xf32> to vector<1x1x32xf32>
    %59 = vector.broadcast %58 : vector<1x1x32xf32> to vector<4x16x32xf32>
    %60 = arith.mulf %56, %59 : vector<4x16x32xf32>
    %61 = arith.addf %54, %60 : vector<4x16x32xf32>
    %62 = vector.extract_strided_slice %17 {offsets = [0, 0, 2, 0], sizes = [6, 1, 16, 32], strides = [1, 1, 1, 1]} : vector<6x1x24x32xf32> to vector<6x1x16x32xf32>
    %63 = vector.extract_strided_slice %62 {offsets = [0, 0, 0, 0], sizes = [4, 1, 16, 32], strides = [1, 1, 1, 1]} : vector<6x1x16x32xf32> to vector<4x1x16x32xf32>
    %64 = vector.shape_cast %63 : vector<4x1x16x32xf32> to vector<4x16x32xf32>
    %65 = vector.extract_strided_slice %18 {offsets = [2, 0], sizes = [1, 32], strides = [1, 1]} : vector<9x32xf32> to vector<1x32xf32>
    %66 = vector.shape_cast %65 : vector<1x32xf32> to vector<1x1x32xf32>
    %67 = vector.broadcast %66 : vector<1x1x32xf32> to vector<4x16x32xf32>
    %68 = arith.mulf %64, %67 : vector<4x16x32xf32>
    %69 = arith.addf %61, %68 : vector<4x16x32xf32>
    %70 = vector.extract_strided_slice %62 {offsets = [1, 0, 0, 0], sizes = [4, 1, 16, 32], strides = [1, 1, 1, 1]} : vector<6x1x16x32xf32> to vector<4x1x16x32xf32>
    %71 = vector.shape_cast %70 : vector<4x1x16x32xf32> to vector<4x16x32xf32>
    %72 = vector.extract_strided_slice %18 {offsets = [5, 0], sizes = [1, 32], strides = [1, 1]} : vector<9x32xf32> to vector<1x32xf32>
    %73 = vector.shape_cast %72 : vector<1x32xf32> to vector<1x1x32xf32>
    %74 = vector.broadcast %73 : vector<1x1x32xf32> to vector<4x16x32xf32>
    %75 = arith.mulf %71, %74 : vector<4x16x32xf32>
    %76 = arith.addf %69, %75 : vector<4x16x32xf32>
    %77 = vector.extract_strided_slice %62 {offsets = [2, 0, 0, 0], sizes = [4, 1, 16, 32], strides = [1, 1, 1, 1]} : vector<6x1x16x32xf32> to vector<4x1x16x32xf32>
    %78 = vector.shape_cast %77 : vector<4x1x16x32xf32> to vector<4x16x32xf32>
    %79 = vector.extract_strided_slice %18 {offsets = [8, 0], sizes = [1, 32], strides = [1, 1]} : vector<9x32xf32> to vector<1x32xf32>
    %80 = vector.shape_cast %79 : vector<1x32xf32> to vector<1x1x32xf32>
    %81 = vector.broadcast %80 : vector<1x1x32xf32> to vector<4x16x32xf32>
    %82 = arith.mulf %78, %81 : vector<4x16x32xf32>
    %83 = arith.addf %76, %82 : vector<4x16x32xf32>
    %c0_10 = arith.constant 0 : index
    %c0_11 = arith.constant 0 : index
    %84 = vector.load %arg5[%c0_10, %c0_11] : memref<1x32xf32, #tpu.memory_space<vmem>>, vector<1x32xf32>
    %85 = vector.shape_cast %84 : vector<1x32xf32> to vector<1x1x32xf32>
    %86 = vector.broadcast %85 : vector<1x1x32xf32> to vector<4x16x32xf32>
    %87 = arith.addf %83, %86 : vector<4x16x32xf32>
    %cst_12 = arith.constant 3.000000e+00 : f32
    %88 = vector.broadcast %cst_12 : f32 to vector<4x16x32xf32>
    %89 = arith.addf %87, %88 : vector<4x16x32xf32>
    %cst_13 = arith.constant 0.000000e+00 : f32
    %cst_14 = arith.constant 6.000000e+00 : f32
    %90 = vector.broadcast %cst_13 : f32 to vector<4x16x32xf32>
    %91 = arith.maximumf %90, %89 : vector<4x16x32xf32>
    %92 = vector.broadcast %cst_14 : f32 to vector<4x16x32xf32>
    %93 = arith.minimumf %92, %91 : vector<4x16x32xf32>
    %94 = arith.mulf %87, %93 : vector<4x16x32xf32>
    %cst_15 = arith.constant 0.166666672 : f32
    %95 = vector.broadcast %cst_15 : f32 to vector<4x16x32xf32>
    %96 = arith.mulf %94, %95 : vector<4x16x32xf32>
    %97 = vector.shape_cast %96 : vector<4x16x32xf32> to vector<64x32xf32>
    %c64_i32 = arith.constant 64 : i32
    %98 = arith.muli %arg1, %c64_i32 : i32
    %99 = tpu.assume_multiple %98, 64 : i32
    %100 = arith.index_cast %99 : i32 to index
    %c0_16 = arith.constant 0 : index
    %101 = vector.load %arg13[%100, %c0_16] : memref<256x32xf32, #tpu.memory_space<vmem>>, vector<64x32xf32>
    tpu.vector_store %arg13[%100, %c0_16], %97 {strides = array<i32>} : memref<256x32xf32, #tpu.memory_space<vmem>>, vector<64x32xf32>,
    %c3_i32 = arith.constant 3 : i32
    %102 = arith.cmpi eq, %arg1, %c3_i32 : i32
    %103 = arith.extui %102 : i1 to i32
    %c0_i32 = arith.constant 0 : i32
    %104 = arith.cmpi ne, %103, %c0_i32 : i32
    scf.if %104 {
      %c0_17 = arith.constant 0 : index
      %c0_18 = arith.constant 0 : index
      %105 = vector.load %arg13[%c0_17, %c0_18] : memref<256x32xf32, #tpu.memory_space<vmem>>, vector<256x32xf32>
      %cst_19 = arith.constant dense<0.000000e+00> : vector<32xf32>
      %106 = vector.multi_reduction <add>, %105, %cst_19 [0] : vector<256x32xf32> to vector<32xf32>
      %107 = vector.shape_cast %106 : vector<32xf32> to vector<1x32xf32>
      %cst_20 = arith.constant 3.906250e-03 : f32
      %108 = vector.broadcast %cst_20 : f32 to vector<1x32xf32>
      %109 = arith.mulf %107, %108 : vector<1x32xf32>
      %c0_21 = arith.constant 0 : index
      %c0_22 = arith.constant 0 : index
      %110 = vector.load %arg6[%c0_21, %c0_22] : memref<32x8xf32, #tpu.memory_space<vmem>>, vector<32x8xf32>
      %cst_23 = arith.constant dense<0.000000e+00> : vector<1x8xf32>
      %111 = tpu.matmul %109, %110, %cst_23 {dimension_numbers = #tpu.dot_dimension_numbers<[1], [0], [0], [1], [0, 0, 1, 1], [], []>} : vector<1x32xf32>, vector<32x8xf32>, vector<1x8xf32> -> vector<1x8xf32>
      %c0_24 = arith.constant 0 : index
      %c0_25 = arith.constant 0 : index
      %112 = vector.load %arg7[%c0_24, %c0_25] : memref<1x8xf32, #tpu.memory_space<vmem>>, vector<1x8xf32>
      %113 = arith.addf %111, %112 : vector<1x8xf32>
      %cst_26 = arith.constant 0.000000e+00 : f32
      %114 = vector.broadcast %cst_26 : f32 to vector<1x8xf32>
      %115 = arith.maximumf %113, %114 : vector<1x8xf32>
      %c0_27 = arith.constant 0 : index
      %c0_28 = arith.constant 0 : index
      %116 = vector.load %arg8[%c0_27, %c0_28] : memref<8x32xf32, #tpu.memory_space<vmem>>, vector<8x32xf32>
      %cst_29 = arith.constant dense<0.000000e+00> : vector<1x32xf32>
      %117 = tpu.matmul %115, %116, %cst_29 {dimension_numbers = #tpu.dot_dimension_numbers<[1], [0], [0], [1], [0, 0, 1, 1], [], []>} : vector<1x8xf32>, vector<8x32xf32>, vector<1x32xf32> -> vector<1x32xf32>
      %c0_30 = arith.constant 0 : index
      %c0_31 = arith.constant 0 : index
      %118 = vector.load %arg9[%c0_30, %c0_31] : memref<1x32xf32, #tpu.memory_space<vmem>>, vector<1x32xf32>
      %119 = arith.addf %117, %118 : vector<1x32xf32>
      %cst_32 = arith.constant 3.000000e+00 : f32
      %120 = vector.broadcast %cst_32 : f32 to vector<1x32xf32>
      %121 = arith.addf %119, %120 : vector<1x32xf32>
      %cst_33 = arith.constant 0.000000e+00 : f32
      %cst_34 = arith.constant 6.000000e+00 : f32
      %122 = vector.broadcast %cst_33 : f32 to vector<1x32xf32>
      %123 = arith.maximumf %122, %121 : vector<1x32xf32>
      %124 = vector.broadcast %cst_34 : f32 to vector<1x32xf32>
      %125 = arith.minimumf %124, %123 : vector<1x32xf32>
      %cst_35 = arith.constant 0.166666672 : f32
      %126 = vector.broadcast %cst_35 : f32 to vector<1x32xf32>
      %127 = arith.mulf %125, %126 : vector<1x32xf32>
      %128 = vector.broadcast %127 : vector<1x32xf32> to vector<256x32xf32>
      %129 = arith.mulf %105, %128 : vector<256x32xf32>
      %c0_36 = arith.constant 0 : index
      %c0_37 = arith.constant 0 : index
      %130 = vector.load %arg10[%c0_36, %c0_37] : memref<32x8xf32, #tpu.memory_space<vmem>>, vector<32x8xf32>
      %cst_38 = arith.constant dense<0.000000e+00> : vector<256x8xf32>
      %131 = tpu.matmul %129, %130, %cst_38 {dimension_numbers = #tpu.dot_dimension_numbers<[1], [0], [0], [1], [0, 0, 1, 1], [], []>} : vector<256x32xf32>, vector<32x8xf32>, vector<256x8xf32> -> vector<256x8xf32>
      %c0_39 = arith.constant 0 : index
      %c0_40 = arith.constant 0 : index
      %132 = vector.load %arg11[%c0_39, %c0_40] : memref<1x8xf32, #tpu.memory_space<vmem>>, vector<1x8xf32>
      %133 = vector.broadcast %132 : vector<1x8xf32> to vector<256x8xf32>
      %134 = arith.addf %131, %133 : vector<256x8xf32>
      %c0_41 = arith.constant 0 : index
      %c1 = arith.constant 1 : index
      %c0_42 = arith.constant 0 : index
      %c0_43 = arith.constant 0 : index
      %135 = vector.load %arg2[%c0_41, %c1, %c0_42, %c0_43] : memref<1x18x24x9xf32, #tpu.memory_space<vmem>>, vector<1x16x24x9xf32>
      %136 = vector.shape_cast %135 : vector<1x16x24x9xf32> to vector<16x24x9xf32>
      %137 = vector.extract_strided_slice %136 {offsets = [0, 1, 0], sizes = [16, 16, 8], strides = [1, 1, 1]} : vector<16x24x9xf32> to vector<16x16x8xf32>
      %138 = vector.shape_cast %137 : vector<16x16x8xf32> to vector<256x8xf32>
      %139 = arith.addf %134, %138 : vector<256x8xf32>
      %c0_44 = arith.constant 0 : index
      %c0_45 = arith.constant 0 : index
      %c0_46 = arith.constant 0 : index
      %140 = vector.load %arg12[%c0_44, %c0_45, %c0_46] : memref<1x256x8xf32, #tpu.memory_space<vmem>>, vector<1x256x8xf32>
      %141 = vector.shape_cast %140 : vector<1x256x8xf32> to vector<256x8xf32>
      %142 = vector.shape_cast %139 : vector<256x8xf32> to vector<1x256x8xf32>
      tpu.vector_store %arg12[%c0_44, %c0_45, %c0_46], %142 {strides = array<i32>} : memref<1x256x8xf32, #tpu.memory_space<vmem>>, vector<1x256x8xf32>,
    } else {
    }
    return
  }
  func.func @transform_0(%arg0: i32, %arg1: i32) -> (i32, i32, i32, i32) {
    %c0_i32 = arith.constant 0 : i32
    %c0_i32_0 = arith.constant 0 : i32
    %c0_i32_1 = arith.constant 0 : i32
    %c0_i32_2 = arith.constant 0 : i32
    return %arg0, %c0_i32, %c0_i32_0, %c0_i32_1 : i32, i32, i32, i32
  }
  func.func @transform_1(%arg0: i32, %arg1: i32) -> (i32, i32) {
    %c0_i32 = arith.constant 0 : i32
    %c0_i32_0 = arith.constant 0 : i32
    %c0_i32_1 = arith.constant 0 : i32
    return %c0_i32, %c0_i32_0 : i32, i32
  }
  func.func @transform_2(%arg0: i32, %arg1: i32) -> (i32, i32) {
    %c0_i32 = arith.constant 0 : i32
    %c0_i32_0 = arith.constant 0 : i32
    %c0_i32_1 = arith.constant 0 : i32
    return %c0_i32, %c0_i32_0 : i32, i32
  }
  func.func @transform_3(%arg0: i32, %arg1: i32) -> (i32, i32) {
    %c0_i32 = arith.constant 0 : i32
    %c0_i32_0 = arith.constant 0 : i32
    %c0_i32_1 = arith.constant 0 : i32
    return %c0_i32, %c0_i32_0 : i32, i32
  }
  func.func @transform_4(%arg0: i32, %arg1: i32) -> (i32, i32) {
    %c0_i32 = arith.constant 0 : i32
    %c0_i32_0 = arith.constant 0 : i32
    %c0_i32_1 = arith.constant 0 : i32
    return %c0_i32, %c0_i32_0 : i32, i32
  }
  func.func @transform_5(%arg0: i32, %arg1: i32) -> (i32, i32) {
    %c0_i32 = arith.constant 0 : i32
    %c0_i32_0 = arith.constant 0 : i32
    %c0_i32_1 = arith.constant 0 : i32
    return %c0_i32, %c0_i32_0 : i32, i32
  }
  func.func @transform_6(%arg0: i32, %arg1: i32) -> (i32, i32) {
    %c0_i32 = arith.constant 0 : i32
    %c0_i32_0 = arith.constant 0 : i32
    %c0_i32_1 = arith.constant 0 : i32
    return %c0_i32, %c0_i32_0 : i32, i32
  }
  func.func @transform_7(%arg0: i32, %arg1: i32) -> (i32, i32) {
    %c0_i32 = arith.constant 0 : i32
    %c0_i32_0 = arith.constant 0 : i32
    %c0_i32_1 = arith.constant 0 : i32
    return %c0_i32, %c0_i32_0 : i32, i32
  }
  func.func @transform_8(%arg0: i32, %arg1: i32) -> (i32, i32) {
    %c0_i32 = arith.constant 0 : i32
    %c0_i32_0 = arith.constant 0 : i32
    %c0_i32_1 = arith.constant 0 : i32
    return %c0_i32, %c0_i32_0 : i32, i32
  }
  func.func @transform_9(%arg0: i32, %arg1: i32) -> (i32, i32) {
    %c0_i32 = arith.constant 0 : i32
    %c0_i32_0 = arith.constant 0 : i32
    %c0_i32_1 = arith.constant 0 : i32
    return %c0_i32, %c0_i32_0 : i32, i32
  }
  func.func @transform_10(%arg0: i32, %arg1: i32) -> (i32, i32, i32) {
    %c0_i32 = arith.constant 0 : i32
    %c0_i32_0 = arith.constant 0 : i32
    %c0_i32_1 = arith.constant 0 : i32
    return %arg0, %c0_i32, %c0_i32_0 : i32, i32, i32
  }
}

</mosaic_0001>

<bundles_post_ra>
// kernel: tpu_custom_call.1
= control target key start
LH: loop header
LB: loop body
LE: loop exit
PB: predicated region body
PF: predicated region fallthrough
CT: control target
= control target key end

     0   :  { %s2618_s13 = smov 0   ;;  %s2620_s14 = smov 0   ;;  %s3654_s0 = inlined_call_operand.vmem [shape: f32[2,18,24,9], index: 0, kind: input, shape index: {}]   ;;  %s3655_s1 = inlined_call_operand.vmem [shape: f32[9,32], index: 1, kind: input, shape index: {}]   ;;  %s3656_s2 = inlined_call_operand.vmem [shape: f32[9,32], index: 2, kind: input, shape index: {}]   ;;  %s3657_s3 = inlined_call_operand.vmem [shape: f32[1,32], index: 3, kind: input, shape index: {}]   ;;  %s3658_s4 = inlined_call_operand.vmem [shape: f32[32,8], index: 4, kind: input, shape index: {}]   ;;  %s3659_s5 = inlined_call_operand.vmem [shape: f32[1,8], index: 5, kind: input, shape index: {}]   ;;  %s3660_s6 = inlined_call_operand.vmem [shape: f32[8,32], index: 6, kind: input, shape index: {}]   ;;  %s3661_s7 = inlined_call_operand.vmem [shape: f32[1,32], index: 7, kind: input, shape index: {}]   ;;  %s3662_s8 = inlined_call_operand.vmem [shape: f32[32,8], index: 8, kind: input, shape index: {}]   ;;  %s3663_s9 = inlined_call_operand.vmem [shape: f32[1,8], index: 9, kind: input, shape index: {}]   ;;  %s3664_s10 = inlined_call_operand.vmem [shape: f32[2,256,8], index: 10, kind: output, shape index: {}]  }
   0x1   :  { %s2622_s15 = smov 0   ;;  %s2624_s16 = smov 0  }
   0x2   :  { %s2626_s17 = smov 0  }
   0x3 LB: > { %s29_s18 = sadd.s32 1, %s2551_s15  ;;  %s32_s19 = sadd.s32 1, %s2555_s16  ;;  %s2559_s17 = sphi %s2626_s17, %s20_s17   ;;  %s2555_s16 = sphi %s2624_s16, %s3711_s16   ;;  %s2551_s15 = sphi %s2622_s15, %s3710_s15   ;;  %s2547_s14 = sphi %s2620_s14, %s3709_s14   ;;  %s2543_s13 = sphi %s2618_s13, %s3708_s13  }
   0x4   : > { %p30_p0 = scmp.ge.s32.totalorder %s29_s18, 4  ;;  %p2185_p1 = scmp.ge.s32.totalorder %s2559_s17, 1 }
   0x5   : > { %p324_p2 = scmp.lt.s32.totalorder %s2559_s17, 9 }
   0x6   : > { %s3713_s18 = smov (%p30_p0, %s29_s18), 0  ;;  %s3715_s19 = smov (!%p30_p0, %s32_s19), %s2555_s16 }
   0x7   : > { %p325_p3 = pnand %p2185_p1, %p324_p2  ;;  %p34_p4 = scmp.ge.s32.totalorder %s3715_s19, 2 }
   0x9   : > { %s3717_s19 = smov (%p34_p4, %s3715_s19), 0  ;;  %328 = sbr.rel (%p325_p3) target bundleno = 1052 (0x41c), region = 60 }
   0xe   : > { %v394_v0 = vld [vmem:[%s3655_s1 + $0x8] sm:$0x1]  ;;  %vm450_vm0 = vcmask 1040384   ;;  %v393_v1 = vld [vmem:[%s3655_s1] sm:$0xff]  ;;  %p362_p5 = scmp.lt.s32.totalorder %s2547_s14, 1  ;;  %s2190_s24 = smul.u32 96, %s2543_s13  ;;  %v701_v20 = vlaneseq }
   0xf   : > { %2363 = vmatprep.subr.msk.mxu0 %vm450_vm0, %v394_v0  ;;  %2466 = vmatprep.subr.msk.mxu1 %vm450_vm0, %v394_v0  ;;  %vm395_vm1 = vcmask 72704   ;;  %v699_v24 = vld [vmem:[%s3656_s2] sm:$0xff]  ;;  %vm781_vm2 = vcmask 1046528   ;;  %vm974_vm3 = vcmask 1045504   ;;  %vm1196_vm4 = vcmask 261120   ;;  %p2213_p6 = scmp.ne.s32.totalorder %s2543_s13, 3 }
  0x10   : > { %2364 = vmatpush3.msk.msra.mxu0 %vm450_vm0, %v394_v0  ;;  %2468 = vmatpush3.msk.msra.mxu1 %vm450_vm0, %v394_v0  ;;  %s3719_s14 = smov (!%p362_p5, %s2547_s14), 1  ;;  %v2706_v21 = vshrl.u32 %v701_v20, 7 }
  0x11   : > { %2365 = vmatprep.subr.mxu0 %v393_v1  ;;  %2467 = vmatprep.subr.mxu1 %v393_v1  ;;  %s2478_s25 = smul.u32 432, %s3719_s14  ;;  %s2299_s26 = sshll.u32 %s3719_s14, 8 }
  0x12   : > { %2366 = vmatpush3.msra.mxu0 %v393_v1  ;;  %2469 = vmatpush3.msra.mxu1 %v393_v1  ;;  %s2660_s29 = scalar_lea.vmem %s3664_s10, %s2299_s26  ;;  %3671 = vst [vmem:[#allocation3_spill] sm:$0xff] %v2706_v21  ;;  %v3665_v22 = vsub.s32 0, %v2706_v21  ;;  %v755_v23 = vsub.s32 1, %v2706_v21  ;;  %v820_v26 = vsub.s32 4, %v2706_v21  ;;  %v884_v27 = vsub.s32 7, %v2706_v21  ;;  %s2212_s26 = sshll.u32 %s2543_s13, 6 }
  0x13   : > { %s2665_s12 = scalar_lea.vmem %s3654_s0, %s2478_s25  ;;  %v948_v28 = vsub.s32 2, %v2706_v21  ;;  %v1013_v34 = vsub.s32 5, %v2706_v21  ;;  %v715_v37 = vsub.s32 3, %v2706_v21  ;;  %v735_v47 = vsub.s32 6, %v2706_v21  ;;  %s3093_s27 = scalar_lea.vmem [#allocation2], %s2212_s26 }
  0x14   : > { %s2668_s20 = scalar_lea.vmem %s2665_s12, %s2190_s24  ;;  %v2718_v32 = vrot.slane %v699_v24, %v3665_v22  ;;  %v2720_v33 = vrot.slane %v699_v24, %v755_v23  ;;  %v2724_v42 = vrot.slane %v699_v24, %v820_v26  ;;  %v2726_v43 = vrot.slane %v699_v24, %v884_v27 }
  0x15   : > { %v375_v2 = vld [vmem:[%s2668_s20] sm:$0xff]  ;;  %v385_v3 = vld [vmem:[%s2668_s20 + $0x50] sm:$0xff]  ;;  %v376_v4 = vld [vmem:[%s2668_s20 + $0x8] sm:$0xff]  ;;  %v2728_v44 = vrot.slane %v699_v24, %v948_v28  ;;  %v2731_v52 = vrot.slane %v699_v24, %v1013_v34  ;;  %v2733_v54 = vrot.slane %v699_v24, %v715_v37 }
  0x16   : > { %2367 = vmatprep.mubr.msk.f32.mxu0 %vm395_vm1, %v375_v2  ;;  %2382 = vmatprep.mubr.msk.f32.mxu1 %vm395_vm1, %v385_v3  ;;  %v386_v5 = vld [vmem:[%s2668_s20 + $0x58] sm:$0xff]  ;;  %v377_v6 = vld [vmem:[%s2668_s20 + $0x10] sm:$0xff]  ;;  %v387_v7 = vld [vmem:[%s2668_s20 + $0x60] sm:$0xff] }
  0x17   : > { %2368 = vmatmul.mubr.msk.f32.vlgmr.msra.gmra.mxu0 %vm395_vm1, %v376_v4  ;;  %2383 = vmatmul.mubr.msk.f32.vlgmr.msra.gmra.mxu1 %vm395_vm1, %v386_v5  ;;  %v378_v8 = vld [vmem:[%s2668_s20 + $0x18] sm:$0xff]  ;;  %v388_v9 = vld [vmem:[%s2668_s20 + $0x68] sm:$0xff]  ;;  %v379_v10 = vld [vmem:[%s2668_s20 + $0x20] sm:$0xff]  ;;  %v2737_v5 = vrot.slane %v699_v24, %v735_v47 }
  0x18   : > { %2370 = vmatprep.mubr.msk.f32.mxu0 %vm395_vm1, %v377_v6  ;;  %2385 = vmatprep.mubr.msk.f32.mxu1 %vm395_vm1, %v387_v7  ;;  %v389_v11 = vld [vmem:[%s2668_s20 + $0x70] sm:$0xff]  ;;  %v380_v12 = vld [vmem:[%s2668_s20 + $0x28] sm:$0xff]  ;;  %v390_v13 = vld [vmem:[%s2668_s20 + $0x78] sm:$0xff] }
  0x19   : > { %v381_v14 = vld [vmem:[%s2668_s20 + $0x30] sm:$0xff]  ;;  %v391_v15 = vld [vmem:[%s2668_s20 + $0x80] sm:$0xff]  ;;  %v382_v16 = vld [vmem:[%s2668_s20 + $0x38] sm:$0xff] }
  0x1a   : > { %v392_v17 = vld [vmem:[%s2668_s20 + $0x88] sm:$0xff]  ;;  %v383_v18 = vld [vmem:[%s2668_s20 + $0x40] sm:$0xff] }
  0x1b   : > { %2371 = vmatmul.mubr.msk.f32.gmra.mxu0 %vm395_vm1, %v378_v8  ;;  %2386 = vmatmul.mubr.msk.f32.gmra.mxu1 %vm395_vm1, %v388_v9  ;;  %v384_v19 = vld [vmem:[%s2668_s20 + $0x48] sm:$0xff] }
  0x1c   : > { %2373 = vmatprep.mubr.msk.f32.mxu0 %vm395_vm1, %v379_v10  ;;  %2388 = vmatprep.mubr.msk.f32.mxu1 %vm395_vm1, %v389_v11  ;;  %v2742_v6 = vld [vmem:[%s3656_s2 + $0x8] ss:$0 sm:$0xff] }
  0x1f   : > { %2374 = vmatmul.mubr.msk.f32.gmra.mxu0 %vm395_vm1, %v380_v12  ;;  %2389 = vmatmul.mubr.msk.f32.gmra.mxu1 %vm395_vm1, %v390_v13 }
  0x20   : > { %2376 = vmatprep.mubr.msk.f32.mxu0 %vm395_vm1, %v381_v14  ;;  %2391 = vmatprep.mubr.msk.f32.mxu1 %vm395_vm1, %v391_v15 }
  0x23   : > { %2377 = vmatmul.mubr.msk.f32.gmra.mxu0 %vm395_vm1, %v382_v16  ;;  %2392 = vmatmul.mubr.msk.f32.gmra.mxu1 %vm395_vm1, %v392_v17 }
  0x24   : > { %2379 = vmatprep.mubr.msk.f32.mxu0 %vm395_vm1, %v383_v18 }
  0x27   : > { %2380 = vmatmul.mubr.msk.f32.gmra.mxu0 %vm395_vm1, %v384_v19 }
  0xd7   : > { %v2369_v25 = vpop.f32.mrf.mxu0  ;;  %v2384_v29 = vpop.f32.mrf.mxu1 }
  0xd8   : > { %v610_v30 = vadd.f32 3.0, %v2369_v25  ;;  %v620_v31 = vadd.f32 3.0, %v2384_v29 }
  0xd9   : > { %v520_v35 = vpop.f32.mrf.mxu0  ;;  %v570_v36 = vpop.f32.mrf.mxu1 }
  0xda   : > { %v628_v38 = vmax.f32 %v610_v30, 0.0  ;;  %v638_v39 = vmax.f32 %v620_v31, 0.0  ;;  %v609_v40 = vadd.f32 3.0, %v520_v35  ;;  %v619_v41 = vadd.f32 3.0, %v570_v36 }
  0xdb   : > { %v2372_v45 = vpop.f32.mrf.mxu0  ;;  %v2387_v46 = vpop.f32.mrf.mxu1 }
  0xdc   : > { %v646_v48 = vmin.f32 %v628_v38, 6.0  ;;  %v656_v49 = vmin.f32 %v638_v39, 6.0  ;;  %v627_v50 = vmax.f32 %v609_v40, 0.0  ;;  %v637_v51 = vmax.f32 %v619_v41, 0.0 }
  0xdd   : > { %v612_v53 = vadd.f32 3.0, %v2372_v45  ;;  %v622_v55 = vadd.f32 3.0, %v2387_v46  ;;  %v530_v56 = vpop.f32.mrf.mxu0  ;;  %v580_v57 = vpop.f32.mrf.mxu1 }
  0xde   : > { %v664_v58 = vmul.f32 %v2369_v25, %v646_v48  ;;  %v674_v59 = vmul.f32 %v2384_v29, %v656_v49  ;;  %v645_v60 = vmin.f32 %v627_v50, 6.0  ;;  %v655_v61 = vmin.f32 %v637_v51, 6.0 }
  0xdf   : > { %v630_v62 = vmax.f32 %v612_v53, 0.0  ;;  %v640_v63 = vmax.f32 %v622_v55, 0.0  ;;  %v611_v0 = vadd.f32 3.0, %v530_v56  ;;  %v621_v1 = vadd.f32 3.0, %v580_v57  ;;  %v2375_v24 = vpop.f32.mrf.mxu0  ;;  %v2390_v25 = vpop.f32.mrf.mxu1 }
  0xe0   : > { %v682_v2 = vmul.f32 0.16666667, %v664_v58  ;;  %v2735_v3 = vmul.f32 0.16666667, %v674_v59  ;;  %v663_v4 = vmul.f32 %v645_v60, %v520_v35  ;;  %v673_v7 = vmul.f32 %v655_v61, %v570_v36 }
  0xe1   : > { %v648_v8 = vmin.f32 %v630_v62, 6.0  ;;  %v658_v9 = vmin.f32 %v640_v63, 6.0  ;;  %v629_v13 = vmax.f32 %v611_v0, 0.0  ;;  %v639_v17 = vmax.f32 %v621_v1, 0.0 }
  0xe2   : > { %v2745_v10 = vmul.f32 %v2720_v33, %v682_v2  ;;  %v2748_v11 = vmul.f32 %v2728_v44, %v682_v2  ;;  %v2752_v12 = vmul.f32 %v2724_v42, %v2735_v3  ;;  %v2756_v14 = vmul.f32 %v2726_v43, %v2735_v3 }
  0xe3   : > { %v2760_v15 = vmul.f32 %v2731_v52, %v2735_v3  ;;  %v681_v16 = vmul.f32 0.16666667, %v663_v4  ;;  %v2763_v18 = vmul.f32 %v2718_v32, %v682_v2  ;;  %v2769_v23 = vmul.f32 %v2742_v6, %v2735_v3 }
  0xe4   : > { %3672 = vst [vmem:[#allocation4_spill] sm:$0xff] %v2752_v12  ;;  %3673 = vst [vmem:[#allocation5_spill] sm:$0xff] %v2756_v14  ;;  %v783_v19 = vrot.slane %v2745_v10, 1  ;;  %v976_v20 = vrot.slane %v2748_v11, 2  ;;  %v2774_v29 = vmul.f32 0.16666667, %v673_v7  ;;  %v666_v34 = vmul.f32 %v2372_v45, %v648_v8  ;;  %v540_v8 = vpop.f32.mrf.mxu0 }
  0xe5   : > { %3674 = vst [vmem:[#allocation6_spill] sm:$0xff] %v2760_v15  ;;  %3675 = vst [vmem:[#allocation7_spill] sm:$0xff] %v2769_v23  ;;  %v757_v30 = vmul.f32 %v2720_v33, %v681_v16  ;;  %v950_v31 = vmul.f32 %v2728_v44, %v681_v16  ;;  %v676_v35 = vmul.f32 %v2387_v46, %v658_v9  ;;  %v647_v36 = vmin.f32 %v629_v13, 6.0 }
  0xe6   : > { %v657_v37 = vmin.f32 %v639_v17, 6.0  ;;  %v614_v38 = vadd.f32 3.0, %v2375_v24  ;;  %v624_v39 = vadd.f32 3.0, %v2390_v25  ;;  %v705_v40 = vmul.f32 %v2718_v32, %v681_v16  ;;  %v590_v17 = vpop.f32.mrf.mxu1 }
  0xe7   : > { %v782_v41 = vrot.slane %v757_v30, 1  ;;  %v975_v47 = vrot.slane %v950_v31, 2  ;;  %v684_v48 = vmul.f32 0.16666667, %v666_v34  ;;  %v2779_v49 = vmul.f32 0.16666667, %v676_v35 }
  0xe8   : > { %v665_v50 = vmul.f32 %v647_v36, %v530_v56  ;;  %v675_v51 = vmul.f32 %v657_v37, %v580_v57  ;;  %v632_v53 = vmax.f32 %v614_v38, 0.0  ;;  %v642_v58 = vmax.f32 %v624_v39, 0.0  ;;  %v2393_v28 = vpop.f32.mrf.mxu1 }
  0xe9   : > { %v2782_v55 = vsel %vm781_vm2, %v782_v41, %v783_v19  ;;  %v2787_v45 = vsel %vm974_vm3, %v975_v47, %v976_v20  ;;  %v717_v46 = vmul.f32 %v2733_v54, %v684_v48  ;;  %v2791_v59 = vmul.f32 %v2720_v33, %v684_v48 }
  0xea   : > { %3676 = vst [vmem:[#allocation8_spill] sm:$0xff] %v2787_v45  ;;  %v2794_v60 = vmul.f32 %v2724_v42, %v684_v48  ;;  %v2797_v56 = vmul.f32 %v2728_v44, %v684_v48  ;;  %v2800_v57 = vmul.f32 %v2731_v52, %v684_v48  ;;  %v2803_v61 = vmul.f32 %v2718_v32, %v684_v48 }
  0xeb   : > { %v2805_v62 = vadd.f32 %v717_v46, %v705_v40  ;;  %v683_v63 = vmul.f32 0.16666667, %v665_v50  ;;  %v693_v0 = vmul.f32 0.16666667, %v675_v51  ;;  %v2812_v7 = vmul.f32 %v2737_v5, %v2779_v49  ;;  %v2378_v50 = vpop.f32.mrf.mxu0 }
  0xec   : > { %v650_v38 = vmin.f32 %v632_v53, 6.0  ;;  %v660_v39 = vmin.f32 %v642_v58, 6.0  ;;  %v2838_v53 = vmul.f32 %v2726_v43, %v2779_v49  ;;  %v2842_v58 = vmul.f32 %v2742_v6, %v2779_v49 }
  0xed   : > { %v759_v10 = vmul.f32 %v2720_v33, %v683_v63  ;;  %v952_v13 = vmul.f32 %v2728_v44, %v683_v63  ;;  %v2818_v16 = vmul.f32 %v2733_v54, %v693_v0  ;;  %v2821_v30 = vmul.f32 %v2724_v42, %v693_v0  ;;  %v2864_v9 = vpop.f32.mrf.mxu0 }
  0xee   : > { %v892_v31 = vmul.f32 %v2726_v43, %v693_v0  ;;  %v2825_v34 = vmul.f32 %v2731_v52, %v693_v0  ;;  %v1085_v35 = vmul.f32 %v2742_v6, %v693_v0  ;;  %v2829_v40 = vmul.f32 %v2737_v5, %v693_v0 }
  0xef   : > { %v785_v36 = vrot.slane %v759_v10, 1  ;;  %v978_v37 = vrot.slane %v952_v13, 2  ;;  %v668_v63 = vmul.f32 %v2375_v24, %v650_v38  ;;  %v678_v22 = vmul.f32 %v2390_v25, %v660_v39 }
  0xf0   : > { %v920_v47 = vrot.slane %v892_v31, 1  ;;  %v1113_v46 = vrot.slane %v1085_v35, 2  ;;  %v613_v10 = vadd.f32 3.0, %v540_v8  ;;  %v623_v13 = vadd.f32 3.0, %v590_v17 }
  0xf1   : > { %v2834_v51 = vsel %vm781_vm2, %v783_v19, %v785_v36  ;;  %v2847_v0 = vsel %vm974_vm3, %v976_v20, %v978_v37  ;;  %v686_v19 = vmul.f32 0.16666667, %v668_v63  ;;  %v696_v31 = vmul.f32 0.16666667, %v678_v22  ;;  %v600_v36 = vpop.f32.mrf.mxu1 }
  0xf2   : > { %3677 = vst [vmem:[#allocation9_spill] sm:$0xff] %v2834_v51  ;;  %3678 = vst [vmem:[#allocation10_spill] sm:$0xff] %v2847_v0  ;;  %v616_v24 = vadd.f32 3.0, %v2378_v50  ;;  %v631_v25 = vmax.f32 %v613_v10, 0.0  ;;  %v641_v35 = vmax.f32 %v623_v13, 0.0  ;;  %v626_v38 = vadd.f32 3.0, %v2393_v28 }
  0xf3   : > { %v762_v39 = vmul.f32 %v2720_v33, %v686_v19  ;;  %v824_v27 = vmul.f32 %v2724_v42, %v686_v19  ;;  %v955_v26 = vmul.f32 %v2728_v44, %v686_v19  ;;  %v1017_v48 = vmul.f32 %v2731_v52, %v686_v19 }
  0xf4   : > { %v2855_v11 = vmul.f32 %v2726_v43, %v696_v31  ;;  %v2858_v20 = vmul.f32 %v2742_v6, %v696_v31  ;;  %v649_v22 = vmin.f32 %v631_v25, 6.0  ;;  %v2862_v41 = vmul.f32 %v2737_v5, %v696_v31 }
  0xf5   : > { %v790_v63 = vrot.slane %v762_v39, 1  ;;  %v849_v10 = vrot.slane %v824_v27, 1  ;;  %v983_v13 = vrot.slane %v955_v26, 2  ;;  %v1042_v4 = vrot.slane %v1017_v48, 2 }
  0xf6   : > { %v667_v2 = vmul.f32 %v649_v22, %v540_v8  ;;  %v659_v1 = vmin.f32 %v641_v35, 6.0  ;;  %v3679_v25 = vrot.slane %v2838_v53, 1  ;;  %v634_v27 = vmax.f32 %v616_v24, 0.0 }
  0xf7   : > { %v644_v26 = vmax.f32 %v626_v38, 0.0  ;;  %v3681_v23 = vrot.slane %v2842_v58, 2  ;;  %v615_v8 = vadd.f32 3.0, %v2864_v9  ;;  %v625_v19 = vadd.f32 3.0, %v600_v36 }
  0xf8   : > { %v2871_v37 = vsel %vm781_vm2, %v920_v47, %v3679_v25  ;;  %v685_v39 = vmul.f32 0.16666667, %v667_v2  ;;  %v677_v31 = vmul.f32 %v659_v1, %v590_v17  ;;  %v652_v35 = vmin.f32 %v634_v27, 6.0 }
  0xf9   : > { %3680 = vst [vmem:[#allocation11_spill] sm:$0xff] %v2871_v37  ;;  %v2876_v48 = vsel %vm974_vm3, %v1113_v46, %v3681_v23  ;;  %v662_v22 = vmin.f32 %v644_v26, 6.0  ;;  %v712_v21 = vmul.f32 %v2718_v32, %v2774_v29  ;;  %v724_v1 = vmul.f32 %v2733_v54, %v2779_v49 }
  0xfa   : > { %3682 = vst [vmem:[#allocation12_spill] sm:$0xff] %v2876_v48  ;;  %v718_v47 = vmul.f32 %v2733_v54, %v685_v39  ;;  %v761_v24 = vmul.f32 %v2720_v33, %v685_v39  ;;  %v823_v2 = vmul.f32 %v2724_v42, %v685_v39  ;;  %v2887_v23 = vmul.f32 %v2718_v32, %v685_v39 }
  0xfb   : > { %v954_v17 = vmul.f32 %v2728_v44, %v685_v39  ;;  %v1016_v46 = vmul.f32 %v2731_v52, %v685_v39  ;;  %v695_v38 = vmul.f32 0.16666667, %v677_v31  ;;  %v670_v26 = vmul.f32 %v2378_v50, %v652_v35 }
  0xfc   : > { %v788_v25 = vrot.slane %v761_v24, 1  ;;  %v847_v27 = vrot.slane %v823_v2, 1  ;;  %v680_v48 = vmul.f32 %v2393_v28, %v662_v22  ;;  %v2894_v37 = vadd.f32 %v718_v47, %v2763_v18 }
  0xfd   : > { %v981_v15 = vrot.slane %v954_v17, 2  ;;  %v1040_v0 = vrot.slane %v1016_v46, 2  ;;  %v833_v45 = vmul.f32 %v2724_v42, %v695_v38  ;;  %v894_v14 = vmul.f32 %v2726_v43, %v695_v38 }
  0xfe   : > { %v3683_v12 = vrot.slane %v2791_v59, 1  ;;  %v2902_v39 = vsel %vm781_vm2, %v788_v25, %v790_v63  ;;  %v3684_v50 = vrot.slane %v2794_v60, 1  ;;  %v2910_v31 = vsel %vm781_vm2, %v847_v27, %v849_v10 }
  0xff   : > { %v3685_v35 = vrot.slane %v2797_v56, 2  ;;  %v2918_v59 = vsel %vm974_vm3, %v981_v15, %v983_v13  ;;  %v2926_v60 = vsel %vm974_vm3, %v1040_v0, %v1042_v4  ;;  %v923_v22 = vrot.slane %v894_v14, 1 }
 0x100   : > { %v2899_v51 = vsel %vm781_vm2, %v3683_v12, %v788_v25  ;;  %v2907_v28 = vsel %vm781_vm2, %v3684_v50, %v847_v27  ;;  %v3686_v12 = vrot.slane %v2800_v57, 2  ;;  %v1026_v10 = vmul.f32 %v2731_v52, %v695_v38  ;;  %v2381_v50 = vpop.f32.mrf.mxu0 }
 0x101   : > { %v2915_v18 = vsel %vm974_vm3, %v3685_v35, %v981_v15  ;;  %v1087_v47 = vmul.f32 %v2742_v6, %v695_v38  ;;  %v864_v56 = vrot.slane %v833_v45, 1  ;;  %v698_v24 = vmul.f32 0.16666667, %v680_v48 }
 0x102   : > { %v2923_v63 = vsel %vm974_vm3, %v3686_v12, %v1040_v0  ;;  %v633_v2 = vmax.f32 %v615_v8, 0.0  ;;  %v643_v17 = vmax.f32 %v625_v19, 0.0  ;;  %v3687_v15 = vrot.slane %v2838_v53, 1 }
 0x103   : > { %v1057_v57 = vrot.slane %v1026_v10, 2  ;;  %v1116_v46 = vrot.slane %v1087_v47, 2  ;;  %v2935_v25 = vmul.f32 0.16666667, %v670_v26  ;;  %v897_v4 = vmul.f32 %v2726_v43, %v698_v24 }
 0x104   : > { %v2933_v13 = vsel %vm781_vm2, %v3687_v15, %v923_v22  ;;  %v651_v14 = vmin.f32 %v633_v2, 6.0  ;;  %v661_v0 = vmin.f32 %v643_v17, 6.0  ;;  %v732_v27 = vadd.f32 %v724_v1, %v712_v21  ;;  %v560_v17 = vpop.f32.mrf.mxu0 }
 0x105   : > { %v1090_v45 = vmul.f32 %v2742_v6, %v698_v24  ;;  %v2941_v19 = vmul.f32 %v2720_v33, %v2774_v29  ;;  %v768_v53 = vmul.f32 %v2720_v33, %v2735_v3  ;;  %v832_v48 = vmul.f32 %v2724_v42, %v2779_v49 }
 0x106   : > { %v3688_v8 = vrot.slane %v2842_v58, 2  ;;  %v928_v26 = vrot.slane %v897_v4, 1  ;;  %v669_v21 = vmul.f32 %v651_v14, %v2864_v9  ;;  %v679_v1 = vmul.f32 %v661_v0, %v600_v36 }
 0x107   : > { %v3670_v35 = vrot.slane %v2941_v19, 1  ;;  %v800_v12 = vrot.slane %v768_v53, 1  ;;  %v862_v22 = vrot.slane %v832_v48, 1  ;;  %v2956_v10 = vmul.f32 %v2728_v44, %v2774_v29 }
 0x108   : > { %v2950_v38 = vsel %vm974_vm3, %v3688_v8, %v1116_v46  ;;  %v2958_v47 = vmul.f32 0.16666667, %v669_v21  ;;  %v697_v24 = vmul.f32 0.16666667, %v679_v1  ;;  %v961_v58 = vmul.f32 %v2728_v44, %v2735_v3 }
 0x109   : > { %v1025_v2 = vmul.f32 %v2731_v52, %v2779_v49  ;;  %v1121_v9 = vrot.slane %v1090_v45, 2  ;;  %v801_v36 = vsel %vm781_vm2, %v3670_v35, %v800_v12  ;;  %v3689_v15 = vrot.slane %v2821_v30, 1 }
 0x10a   : > { %v991_v4 = vrot.slane %v2956_v10, 2  ;;  %v744_v14 = vmul.f32 %v2737_v5, %v697_v24  ;;  %v865_v3 = vsel %vm781_vm2, %v862_v22, %v864_v56  ;;  %v896_v0 = vmul.f32 %v2726_v43, %v697_v24 }
 0x10b   : > { %v2970_v46 = vsel %vm781_vm2, %v3689_v15, %v862_v22  ;;  %v993_v49 = vrot.slane %v961_v58, 2  ;;  %v1055_v53 = vrot.slane %v1025_v2, 2  ;;  %v1089_v45 = vmul.f32 %v2742_v6, %v697_v24 }
 0x10c   : > { %v618_v48 = vadd.f32 3.0, %v2381_v50  ;;  %v617_v8 = vadd.f32 3.0, %v560_v17  ;;  %v752_v21 = vadd.f32 %v744_v14, %v732_v27  ;;  %v926_v1 = vrot.slane %v896_v0, 1 }
 0x10d   : > { %v994_v30 = vsel %vm974_vm3, %v991_v4, %v993_v49  ;;  %v709_v12 = vmul.f32 %v2718_v32, %v2958_v47  ;;  %v3690_v15 = vrot.slane %v2825_v34, 2  ;;  %v1119_v22 = vrot.slane %v1089_v45, 2 }
 0x10e   : > { %v636_v58 = vmax.f32 %v618_v48, 0.0  ;;  %v635_v2 = vmax.f32 %v617_v8, 0.0  ;;  %v817_v24 = vadd.f32 %v801_v36, %v752_v21  ;;  %v3691_v35 = vrot.slane %v2855_v11, 1 }
 0x10f   : > { %v2985_v56 = vsel %vm974_vm3, %v3690_v15, %v1055_v53  ;;  %v1058_v14 = vsel %vm974_vm3, %v1055_v53, %v1057_v57  ;;  %v710_v0 = vmul.f32 %v2718_v32, %v2935_v25  ;;  %v929_v49 = vsel %vm781_vm2, %v926_v1, %v928_v26 }
 0x110   : > { %v2990_v27 = vsel %vm781_vm2, %v3691_v35, %v926_v1  ;;  %v3692_v34 = vrot.slane %v2858_v20, 2  ;;  %v654_v45 = vmin.f32 %v636_v58, 6.0  ;;  %v653_v48 = vmin.f32 %v635_v2, 6.0 }
 0x111   : > { %v881_v36 = vadd.f32 %v865_v3, %v817_v24  ;;  %v719_v11 = vmul.f32 %v2733_v54, %v2958_v47  ;;  %v720_v35 = vmul.f32 %v2733_v54, %v2935_v25  ;;  %v722_v57 = vmul.f32 %v2733_v54, %v2774_v29 }
 0x112   : > { %v2999_v15 = vsel %vm974_vm3, %v3692_v34, %v1119_v22  ;;  %v672_v53 = vmul.f32 %v2381_v50, %v654_v45  ;;  %v671_v8 = vmul.f32 %v653_v48, %v560_v17  ;;  %v737_v20 = vmul.f32 %v2737_v5, %v2958_v47 }
 0x113   : > { %v738_v26 = vmul.f32 %v2737_v5, %v2935_v25  ;;  %v945_v21 = vadd.f32 %v929_v49, %v881_v36  ;;  %v1122_v3 = vsel %vm974_vm3, %v1119_v22, %v1121_v9  ;;  %v727_v1 = vadd.f32 %v719_v11, %v2803_v61 }
 0x114   : > { %v730_v58 = vadd.f32 %v722_v57, %v710_v0  ;;  %v3013_v2 = vmul.f32 0.16666667, %v672_v53  ;;  %v3015_v24 = vmul.f32 0.16666667, %v671_v8  ;;  %v728_v34 = vadd.f32 %v720_v35, %v2887_v23 }
 0x115   : > { %v740_v50 = vmul.f32 %v2737_v5, %v2774_v29  ;;  %v1010_v17 = vadd.f32 %v994_v30, %v945_v21  ;;  %v745_v45 = vadd.f32 %v737_v20, %v2805_v62  ;;  %v746_v48 = vadd.f32 %v738_v26, %v2894_v37 }
 0x116   : > { %v763_v9 = vmul.f32 %v2720_v33, %v2958_v47  ;;  %v711_v61 = vmul.f32 %v2718_v32, %v3013_v2  ;;  %v766_v22 = vmul.f32 %v2720_v33, %v3013_v2  ;;  %v959_v23 = vmul.f32 %v2728_v44, %v3013_v2  ;;  %v3040_v32 = vld [vmem:[%s3657_s3] ss:$0 sm:$0xff] }
 0x117   : > { %v721_v0 = vmul.f32 %v2733_v54, %v3013_v2  ;;  %v1074_v30 = vadd.f32 %v1058_v14, %v1010_v17  ;;  %v739_v62 = vmul.f32 %v2737_v5, %v3013_v2  ;;  %v750_v37 = vadd.f32 %v2812_v7, %v730_v58 }
 0x118   : > { %v764_v49 = vmul.f32 %v2720_v33, %v2935_v25  ;;  %v731_v36 = vadd.f32 %v2818_v16, %v711_v61  ;;  %v797_v11 = vrot.slane %v766_v22, 1  ;;  %v990_v35 = vrot.slane %v959_v23, 2 }
 0x119   : > { %v729_v57 = vadd.f32 %v721_v0, %v709_v12  ;;  %v1138_v54 = vadd.f32 %v1122_v3, %v1074_v30  ;;  %v747_v14 = vadd.f32 %v739_v62, %v727_v1  ;;  %v765_v5 = vmul.f32 %v2720_v33, %v3015_v24 }
 0x11a   : > { %v792_v53 = vrot.slane %v763_v9, 1  ;;  %v751_v7 = vadd.f32 %v2862_v41, %v731_v36  ;;  %v3693_v8 = vrot.slane %v2941_v19, 1  ;;  %v748_v26 = vadd.f32 %v740_v50, %v728_v34  ;;  %v3694_v41 = vld [vmem:[#allocation9_spill] sm:$0xff] }
 0x11b   : > { %v749_v21 = vadd.f32 %v2829_v40, %v729_v57  ;;  %v1153_v16 = vadd.f32 %v3040_v32, %v1138_v54  ;;  %v992_v12 = vsel %vm974_vm3, %v990_v35, %v991_v4  ;;  %v793_v3 = vrot.slane %v764_v49, 1 }
 0x11c   : > { %v799_v20 = vsel %vm781_vm2, %v797_v11, %v3693_v8  ;;  %v795_v1 = vrot.slane %v765_v5, 1  ;;  %v810_v58 = vadd.f32 %v2782_v55, %v745_v45  ;;  %v811_v17 = vadd.f32 %v3694_v41, %v746_v48 }
 0x11d   : > { %v816_v33 = vadd.f32 %v799_v20, %v751_v7  ;;  %v812_v19 = vadd.f32 %v2899_v51, %v747_v14  ;;  %v1161_v9 = vadd.f32 3.0, %v1153_v16  ;;  %v794_v34 = vsel %vm781_vm2, %v792_v53, %v793_v3  ;;  %v3695_v53 = vld [vmem:[#allocation4_spill] sm:$0xff] }
 0x11e   : > { %v796_v40 = vsel %vm781_vm2, %v793_v3, %v795_v1  ;;  %v825_v10 = vmul.f32 %v2724_v42, %v2958_v47  ;;  %v813_v50 = vadd.f32 %v2902_v39, %v748_v26  ;;  %v814_v61 = vadd.f32 %v794_v34, %v749_v21 }
 0x11f   : > { %v880_v4 = vadd.f32 %v2970_v46, %v816_v33  ;;  %v826_v55 = vmul.f32 %v2724_v42, %v2935_v25  ;;  %v1169_v45 = vmax.f32 %v1161_v9, 0.0  ;;  %v827_v51 = vmul.f32 %v2724_v42, %v3015_v24 }
 0x120   : > { %v828_v48 = vmul.f32 %v2724_v42, %v3013_v2  ;;  %v829_v22 = vmul.f32 %v2724_v42, %v2774_v29  ;;  %v815_v0 = vadd.f32 %v796_v40, %v750_v37  ;;  %v851_v46 = vrot.slane %v825_v10, 1 }
 0x121   : > { %v944_v23 = vadd.f32 %v2990_v27, %v880_v4  ;;  %v852_v30 = vrot.slane %v826_v55, 1  ;;  %v1177_v39 = vmin.f32 %v1169_v45, 6.0  ;;  %v854_v62 = vrot.slane %v827_v51, 1  ;;  %v3698_v45 = vld [vmem:[#allocation5_spill] sm:$0xff] }
 0x122   : > { %v856_v49 = vrot.slane %v828_v48, 1  ;;  %v857_v36 = vrot.slane %v829_v22, 1  ;;  %v874_v57 = vadd.f32 %v2907_v28, %v810_v58  ;;  %v886_v54 = vmul.f32 %v2726_v43, %v2958_v47 }
 0x123   : > { %v1009_v11 = vadd.f32 %v992_v12, %v944_v23  ;;  %v853_v35 = vsel %vm781_vm2, %v851_v46, %v852_v30  ;;  %v1185_v14 = vmul.f32 %v1177_v39, %v1153_v16  ;;  %v855_v42 = vsel %vm781_vm2, %v852_v30, %v854_v62 }
 0x124   : > { %v858_v27 = vsel %vm781_vm2, %v856_v49, %v857_v36  ;;  %v875_v37 = vadd.f32 %v2910_v31, %v811_v17  ;;  %v3696_v7 = vrot.slane %v3695_v53, 1  ;;  %v876_v20 = vadd.f32 %v853_v35, %v812_v19  ;;  %v3697_v17 = vld [vmem:[#allocation11_spill] sm:$0xff] }
 0x125   : > { %v1073_v5 = vadd.f32 %v2985_v56, %v1009_v11  ;;  %v878_v26 = vadd.f32 %v858_v27, %v814_v61  ;;  %v1193_v21 = vmul.f32 0.16666667, %v1185_v14  ;;  %v877_v28 = vadd.f32 %v855_v42, %v813_v50  ;;  %v3700_v11 = vld [vmem:[#allocation8_spill] sm:$0xff] }
 0x126   : > { %v860_v8 = vsel %vm781_vm2, %v857_v36, %v3696_v7  ;;  %v887_v12 = vmul.f32 %v2726_v43, %v2935_v25  ;;  %v888_v16 = vmul.f32 %v2726_v43, %v3015_v24  ;;  %v889_v31 = vmul.f32 %v2726_v43, %v3013_v2 }
 0x127   : > { %v1137_v3 = vadd.f32 %v2999_v15, %v1073_v5  ;;  %v890_v56 = vmul.f32 %v2726_v43, %v2774_v29  ;;  %v910_v1 = vrot.slane %v886_v54, 1  ;;  %1204 = vst.msk [vmem:[%s3093_s27 + $0x38] sm:$0xff] %vm1196_vm4, %v1193_v21  ;;  %v879_v33 = vadd.f32 %v860_v8, %v815_v0 }
 0x128   : > { %v911_v58 = vrot.slane %v887_v12, 1  ;;  %v913_v41 = vrot.slane %v888_v16, 1  ;;  %v942_v19 = vadd.f32 %v3697_v17, %v878_v26  ;;  %v915_v15 = vrot.slane %v889_v31, 1  ;;  %v3702_v17 = vld [vmem:[#allocation6_spill] sm:$0xff] }
 0x129   : > { %v1152_v9 = vadd.f32 %v3040_v32, %v1137_v3  ;;  %v916_v34 = vrot.slane %v890_v56, 1  ;;  %v956_v40 = vmul.f32 %v2728_v44, %v2958_v47  ;;  %v957_v4 = vmul.f32 %v2728_v44, %v2935_v25 }
 0x12a   : > { %v912_v43 = vsel %vm781_vm2, %v910_v1, %v911_v58  ;;  %v914_v10 = vsel %vm781_vm2, %v911_v58, %v913_v41  ;;  %v958_v50 = vmul.f32 %v2728_v44, %v3015_v24  ;;  %v3699_v51 = vrot.slane %v3698_v45, 1  ;;  %v3701_v44 = vld [vmem:[#allocation10_spill] sm:$0xff]  ;;  %v3705_v45 = vld [vmem:[#allocation12_spill] sm:$0xff] }
 0x12b   : > { %v1160_v61 = vadd.f32 3.0, %v1152_v9  ;;  %v917_v55 = vsel %vm781_vm2, %v915_v15, %v916_v34  ;;  %v938_v22 = vadd.f32 %v912_v43, %v874_v57  ;;  %v939_v23 = vadd.f32 %v914_v10, %v875_v37 }
 0x12c   : > { %v919_v48 = vsel %vm781_vm2, %v916_v34, %v3699_v51  ;;  %v940_v0 = vadd.f32 %v917_v55, %v876_v20  ;;  %v985_v30 = vrot.slane %v956_v40, 2  ;;  %v943_v62 = vadd.f32 %v2933_v13, %v879_v33 }
 0x12d   : > { %v941_v46 = vadd.f32 %v919_v48, %v877_v28  ;;  %v1168_v39 = vmax.f32 %v1160_v61, 0.0  ;;  %v986_v49 = vrot.slane %v957_v4, 2  ;;  %v988_v36 = vrot.slane %v958_v50, 2  ;;  %v3704_v50 = vld [vmem:[#allocation7_spill] sm:$0xff] }
 0x12e   : > { %v1003_v35 = vadd.f32 %v3700_v11, %v938_v22  ;;  %v1004_v54 = vadd.f32 %v3701_v44, %v939_v23  ;;  %v1005_v14 = vadd.f32 %v2915_v18, %v940_v0  ;;  %v1018_v42 = vmul.f32 %v2731_v52, %v2958_v47 }
 0x12f   : > { %v1176_v27 = vmin.f32 %v1168_v39, 6.0  ;;  %v987_v57 = vsel %vm974_vm3, %v985_v30, %v986_v49  ;;  %v1006_v37 = vadd.f32 %v2918_v59, %v941_v46  ;;  %v1019_v5 = vmul.f32 %v2731_v52, %v2935_v25 }
 0x130   : > { %v989_v13 = vsel %vm974_vm3, %v986_v49, %v988_v36  ;;  %v1007_v53 = vadd.f32 %v987_v57, %v942_v19  ;;  %v1020_v7 = vmul.f32 %v2731_v52, %v3015_v24  ;;  %v1021_v18 = vmul.f32 %v2731_v52, %v3013_v2 }
 0x131   : > { %v1184_v8 = vmul.f32 %v1176_v27, %v1152_v9  ;;  %v1008_v20 = vadd.f32 %v989_v13, %v943_v62  ;;  %v1022_v26 = vmul.f32 %v2731_v52, %v2774_v29  ;;  %v1044_v21 = vrot.slane %v1018_v42, 2 }
 0x132   : > { %v1045_v59 = vrot.slane %v1019_v5, 2  ;;  %v1047_v28 = vrot.slane %v1020_v7, 2  ;;  %v1049_v12 = vrot.slane %v1021_v18, 2  ;;  %v1067_v16 = vadd.f32 %v2923_v63, %v1003_v35 }
 0x133   : > { %v1192_v3 = vmul.f32 0.16666667, %v1184_v8  ;;  %v1050_v31 = vrot.slane %v1022_v26, 2  ;;  %v1068_v56 = vadd.f32 %v2926_v60, %v1004_v54  ;;  %v1079_v1 = vmul.f32 %v2742_v6, %v2958_v47 }
 0x134   : > { %v1046_v33 = vsel %vm974_vm3, %v1044_v21, %v1045_v59  ;;  %v1048_v58 = vsel %vm974_vm3, %v1045_v59, %v1047_v28  ;;  %v1080_v52 = vmul.f32 %v2742_v6, %v2935_v25  ;;  %v1081_v41 = vmul.f32 %v2742_v6, %v3015_v24 }
 0x135   : > { %1203 = vst.msk [vmem:[%s3093_s27 + $0x30] sm:$0xff] %vm1196_vm4, %v1192_v3  ;;  %v1051_v63 = vsel %vm974_vm3, %v1049_v12, %v1050_v31  ;;  %v3703_v19 = vrot.slane %v3702_v17, 2  ;;  %v1069_v9 = vadd.f32 %v1046_v33, %v1005_v14  ;;  %v1082_v47 = vmul.f32 %v2742_v6, %v3013_v2 }
 0x136   : > { %v1071_v15 = vadd.f32 %v1051_v63, %v1007_v53  ;;  %v1083_v25 = vmul.f32 %v2742_v6, %v2774_v29  ;;  %v1103_v40 = vrot.slane %v1079_v1, 2  ;;  %v1070_v43 = vadd.f32 %v1048_v58, %v1006_v37 }
 0x137   : > { %v1053_v60 = vsel %vm974_vm3, %v1050_v31, %v3703_v19  ;;  %v1104_v24 = vrot.slane %v1080_v52, 2  ;;  %v1106_v10 = vrot.slane %v1081_v41, 2  ;;  %v1108_v4 = vrot.slane %v1082_v47, 2 }
 0x138   : > { %v1072_v34 = vadd.f32 %v1053_v60, %v1008_v20  ;;  %v1111_v61 = vrot.slane %v3704_v50, 2  ;;  %v1109_v55 = vrot.slane %v1083_v25, 2  ;;  %v1135_v51 = vadd.f32 %v3705_v45, %v1071_v15 }
 0x139   : > { %v1105_v22 = vsel %vm974_vm3, %v1103_v40, %v1104_v24  ;;  %v1107_v2 = vsel %vm974_vm3, %v1104_v24, %v1106_v10 }
 0x13a   : > { %v1136_v48 = vadd.f32 %v2950_v38, %v1072_v34  ;;  %v1110_v23 = vsel %vm974_vm3, %v1108_v4, %v1109_v55  ;;  %v1112_v6 = vsel %vm974_vm3, %v1109_v55, %v1111_v61  ;;  %v1131_v29 = vadd.f32 %v1105_v22, %v1067_v16 }
 0x13b   : > { %v1132_v0 = vadd.f32 %v1107_v2, %v1068_v56  ;;  %v1133_v46 = vadd.f32 %v1110_v23, %v1069_v9  ;;  %v1134_v30 = vadd.f32 %v1112_v6, %v1070_v43  ;;  %v1150_v39 = vadd.f32 %v3040_v32, %v1135_v51 }
 0x13c   : > { %v1151_v62 = vadd.f32 %v3040_v32, %v1136_v48  ;;  %v1146_v49 = vadd.f32 %v3040_v32, %v1131_v29 }
 0x13d   : > { %v1147_v38 = vadd.f32 %v3040_v32, %v1132_v0  ;;  %v1148_v36 = vadd.f32 %v3040_v32, %v1133_v46  ;;  %v1149_v11 = vadd.f32 %v3040_v32, %v1134_v30  ;;  %v1158_v35 = vadd.f32 3.0, %v1150_v39 }
 0x13e   : > { %v1159_v44 = vadd.f32 3.0, %v1151_v62  ;;  %v1154_v54 = vadd.f32 3.0, %v1146_v49 }
 0x13f   : > { %v1155_v14 = vadd.f32 3.0, %v1147_v38  ;;  %v1156_v42 = vadd.f32 3.0, %v1148_v36  ;;  %v1157_v27 = vadd.f32 3.0, %v1149_v11  ;;  %v1166_v57 = vmax.f32 %v1158_v35, 0.0 }
 0x140   : > { %v1167_v37 = vmax.f32 %v1159_v44, 0.0  ;;  %v1162_v5 = vmax.f32 %v1154_v54, 0.0 }
 0x141   : > { %v1163_v13 = vmax.f32 %v1155_v14, 0.0  ;;  %v1164_v53 = vmax.f32 %v1156_v42, 0.0  ;;  %v1165_v7 = vmax.f32 %v1157_v27, 0.0  ;;  %v1174_v18 = vmin.f32 %v1166_v57, 6.0 }
 0x142   : > { %v1175_v8 = vmin.f32 %v1167_v37, 6.0  ;;  %v1170_v20 = vmin.f32 %v1162_v5, 6.0 }
 0x143   : > { %v1171_v26 = vmin.f32 %v1163_v13, 6.0  ;;  %v1172_v21 = vmin.f32 %v1164_v53, 6.0  ;;  %v1173_v32 = vmin.f32 %v1165_v7, 6.0  ;;  %v1182_v59 = vmul.f32 %v1174_v18, %v1150_v39 }
 0x144   : > { %v1183_v28 = vmul.f32 %v1175_v8, %v1151_v62  ;;  %v1178_v12 = vmul.f32 %v1170_v20, %v1146_v49 }
 0x145   : > { %v1179_v16 = vmul.f32 %v1171_v26, %v1147_v38  ;;  %v1180_v3 = vmul.f32 %v1172_v21, %v1148_v36  ;;  %v1181_v31 = vmul.f32 %v1173_v32, %v1149_v11  ;;  %v1190_v56 = vmul.f32 0.16666667, %v1182_v59 }
 0x146   : > { %v1191_v1 = vmul.f32 0.16666667, %v1183_v28  ;;  %v1186_v33 = vmul.f32 0.16666667, %v1178_v12  ;;  %1208 = sbr.rel (%p2213_p6) target bundleno = 1052 (0x41c), region = 64 }
 0x147   : > { %v1187_v58 = vmul.f32 0.16666667, %v1179_v16  ;;  %v1188_v52 = vmul.f32 0.16666667, %v1180_v3  ;;  %v1189_v41 = vmul.f32 0.16666667, %v1181_v31 }
 0x148   : > { %1201 = vst.msk [vmem:[%s3093_s27 + $0x20] sm:$0xff] %vm1196_vm4, %v1190_v56  ;;  %1202 = vst.msk [vmem:[%s3093_s27 + $0x28] sm:$0xff] %vm1196_vm4, %v1191_v1 }
 0x149   : > { %1197 = vst.msk [vmem:[%s3093_s27] sm:$0xff] %vm1196_vm4, %v1186_v33  ;;  %1198 = vst.msk [vmem:[%s3093_s27 + $0x8] sm:$0xff] %vm1196_vm4, %v1187_v58 }
 0x14a   : > { %1199 = vst.msk [vmem:[%s3093_s27 + $0x10] sm:$0xff] %vm1196_vm4, %v1188_v52  ;;  %1200 = vst.msk [vmem:[%s3093_s27 + $0x18] sm:$0xff] %vm1196_vm4, %v1189_v41 }
 0x14b   : > { %v1314_v63 = vld [vmem:[%s3658_s4 + $0x18] sm:$0xff]  ;;  %v2561_v17 = vmov 0.0   ;;  %v1313_v19 = vld [vmem:[%s3658_s4 + $0x10] sm:$0xff]  ;;  %vm2562_vm5 = vmmov 0   ;;  %v1312_v40 = vld [vmem:[%s3658_s4 + $0x8] sm:$0xff]  ;;  %vm1392_vm6 = vcmask 64512  }
 0x14c   : > { %2394 = vmatprep.subr.mxu0 %v2561_v17  ;;  %2402 = vmatprep.mubr.msk.f32.mxu0 %vm2562_vm5, %v2561_v17  ;;  %v1311_v50 = vld [vmem:[%s3658_s4] sm:$0xff] }
 0x14d   : > { %2395 = vmatpush3.msra.mxu0 %v1314_v63  ;;  %2405 = vmatprep.subr.mxu1 %v2561_v17 }
 0x14e   : > { %2396 = vmatprep.subr.mxu0 %v2561_v17  ;;  %2407 = vmatprep.mubr.msk.f32.mxu1 %vm2562_vm5, %v2561_v17 }
 0x14f   : > { %2397 = vmatpush3.msra.mxu0 %v1313_v19 }
 0x150   : > { %2398 = vmatprep.subr.mxu0 %v2561_v17 }
 0x151   : > { %v3180_v60 = vld [vmem:[#allocation2] sm:$0xff]  ;;  %v3182_v9 = vld [vmem:[#allocation2 + $0x8] sm:$0xff]  ;;  %v3184_v47 = vld [vmem:[#allocation2 + $0x10] sm:$0xff]  ;;  %2399 = vmatpush3.msra.mxu0 %v1312_v40 }
 0x152   : > { %v3186_v15 = vld [vmem:[#allocation2 + $0x18] sm:$0xff]  ;;  %v1241_v34 = vsel %vm1196_vm4, %v3180_v60, 0.0  ;;  %v1242_v25 = vsel %vm1196_vm4, %v3182_v9, 0.0  ;;  %v3195_v43 = vld [vmem:[#allocation2 + $0x20] sm:$0xff]  ;;  %v1244_v10 = vsel %vm1196_vm4, %v3184_v47, 0.0  ;;  %v3204_v61 = vld [vmem:[#allocation2 + $0x28] sm:$0xff]  ;;  %2400 = vmatprep.subr.mxu0 %v2561_v17 }
 0x153   : > { %v1243_v24 = vadd.f32 %v1242_v25, %v1241_v34  ;;  %v1246_v4 = vsel %vm1196_vm4, %v3186_v15, 0.0  ;;  %v1248_v45 = vsel %vm1196_vm4, %v3195_v43, 0.0  ;;  %v3208_v51 = vld [vmem:[#allocation2 + $0x30] sm:$0xff]  ;;  %2401 = vmatpush3.msra.mxu0 %v1311_v50  ;;  %v1250_v22 = vsel %vm1196_vm4, %v3204_v61, 0.0  ;;  %v3212_v2 = vld [vmem:[#allocation2 + $0x38] sm:$0xff]  ;;  %v3216_v29 = vld [vmem:[#allocation2 + $0x40] sm:$0xff] }
 0x154   : > { %v1252_v6 = vsel %vm1196_vm4, %v3208_v51, 0.0  ;;  %v1254_v46 = vsel %vm1196_vm4, %v3212_v2, 0.0  ;;  %v3220_v30 = vld [vmem:[#allocation2 + $0x48] sm:$0xff]  ;;  %v1256_v62 = vsel %vm1196_vm4, %v3216_v29, 0.0  ;;  %v3224_v49 = vld [vmem:[#allocation2 + $0x50] sm:$0xff]  ;;  %v3228_v11 = vld [vmem:[#allocation2 + $0x58] sm:$0xff] }
 0x155   : > { %v1245_v55 = vadd.f32 %v1244_v10, %v1243_v24  ;;  %v1258_v36 = vsel %vm1196_vm4, %v3220_v30, 0.0  ;;  %v1260_v44 = vsel %vm1196_vm4, %v3224_v49, 0.0  ;;  %v3232_v54 = vld [vmem:[#allocation2 + $0x60] sm:$0xff]  ;;  %v1262_v42 = vsel %vm1196_vm4, %v3228_v11, 0.0  ;;  %v3236_v27 = vld [vmem:[#allocation2 + $0x68] sm:$0xff]  ;;  %v3240_v5 = vld [vmem:[#allocation2 + $0x70] sm:$0xff] }
 0x156   : > { %v1264_v37 = vsel %vm1196_vm4, %v3232_v54, 0.0  ;;  %v1266_v53 = vsel %vm1196_vm4, %v3236_v27, 0.0  ;;  %v3244_v7 = vld [vmem:[#allocation2 + $0x78] sm:$0xff]  ;;  %v1268_v8 = vsel %vm1196_vm4, %v3240_v5, 0.0  ;;  %v3248_v20 = vld [vmem:[#allocation2 + $0x80] sm:$0xff]  ;;  %v3252_v32 = vld [vmem:[#allocation2 + $0x88] sm:$0xff] }
 0x157   : > { %v1247_v48 = vadd.f32 %v1246_v4, %v1245_v55  ;;  %v1270_v21 = vsel %vm1196_vm4, %v3244_v7, 0.0  ;;  %v1272_v28 = vsel %vm1196_vm4, %v3248_v20, 0.0  ;;  %v3256_v12 = vld [vmem:[#allocation2 + $0x90] sm:$0xff]  ;;  %v1274_v3 = vsel %vm1196_vm4, %v3252_v32, 0.0  ;;  %v3260_v31 = vld [vmem:[#allocation2 + $0x98] sm:$0xff]  ;;  %v3264_v33 = vld [vmem:[#allocation2 + $0xa0] sm:$0xff] }
 0x158   : > { %v1276_v1 = vsel %vm1196_vm4, %v3256_v12, 0.0  ;;  %v1278_v52 = vsel %vm1196_vm4, %v3260_v31, 0.0  ;;  %v3268_v41 = vld [vmem:[#allocation2 + $0xa8] sm:$0xff]  ;;  %v1280_v17 = vsel %vm1196_vm4, %v3264_v33, 0.0  ;;  %v3272_v19 = vld [vmem:[#allocation2 + $0xb0] sm:$0xff]  ;;  %v3276_v40 = vld [vmem:[#allocation2 + $0xb8] sm:$0xff] }
 0x159   : > { %v1249_v23 = vadd.f32 %v1248_v45, %v1247_v48  ;;  %v1282_v25 = vsel %vm1196_vm4, %v3268_v41, 0.0  ;;  %v1284_v10 = vsel %vm1196_vm4, %v3272_v19, 0.0  ;;  %v3280_v4 = vld [vmem:[#allocation2 + $0xc0] sm:$0xff]  ;;  %v1286_v55 = vsel %vm1196_vm4, %v3276_v40, 0.0  ;;  %v3284_v45 = vld [vmem:[#allocation2 + $0xc8] sm:$0xff] }
 0x15b   : > { %v1251_v0 = vadd.f32 %v1250_v22, %v1249_v23  ;;  %v1288_v22 = vsel %vm1196_vm4, %v3280_v4, 0.0  ;;  %v3288_v23 = vld [vmem:[#allocation2 + $0xd0] sm:$0xff] }
 0x15d   : > { %v1253_v39 = vadd.f32 %v1252_v6, %v1251_v0  ;;  %v1290_v0 = vsel %vm1196_vm4, %v3284_v45, 0.0 }
 0x15f   : > { %v1255_v38 = vadd.f32 %v1254_v46, %v1253_v39  ;;  %v3292_v46 = vld [vmem:[#allocation2 + $0xd8] sm:$0xff] }
 0x161   : > { %v1257_v35 = vadd.f32 %v1256_v62, %v1255_v38  ;;  %v1292_v62 = vsel %vm1196_vm4, %v3288_v23, 0.0  ;;  %v3296_v38 = vld [vmem:[#allocation2 + $0xe0] sm:$0xff] }
 0x163   : > { %v1259_v14 = vadd.f32 %v1258_v36, %v1257_v35  ;;  %v1294_v35 = vsel %vm1196_vm4, %v3292_v46, 0.0 }
 0x165   : > { %v1261_v57 = vadd.f32 %v1260_v44, %v1259_v14  ;;  %v3300_v44 = vld [vmem:[#allocation2 + $0xe8] sm:$0xff] }
 0x167   : > { %v1263_v13 = vadd.f32 %v1262_v42, %v1261_v57  ;;  %v1296_v42 = vsel %vm1196_vm4, %v3296_v38, 0.0  ;;  %v3304_v57 = vld [vmem:[#allocation2 + $0xf0] sm:$0xff] }
 0x169   : > { %v1265_v18 = vadd.f32 %v1264_v37, %v1263_v13  ;;  %v1298_v13 = vsel %vm1196_vm4, %v3300_v44, 0.0 }
 0x16b   : > { %v1267_v26 = vadd.f32 %v1266_v53, %v1265_v18  ;;  %v3308_v53 = vld [vmem:[#allocation2 + $0xf8] sm:$0xff] }
 0x16d   : > { %v1269_v59 = vadd.f32 %v1268_v8, %v1267_v26  ;;  %v1300_v8 = vsel %vm1196_vm4, %v3304_v57, 0.0 }
 0x16f   : > { %v1271_v16 = vadd.f32 %v1270_v21, %v1269_v59  ;;  %v1302_v21 = vsel %vm1196_vm4, %v3308_v53, 0.0 }
 0x171   : > { %v1273_v56 = vadd.f32 %v1272_v28, %v1271_v16 }
 0x173   : > { %v1275_v58 = vadd.f32 %v1274_v3, %v1273_v56 }
 0x175   : > { %v1277_v63 = vadd.f32 %v1276_v1, %v1275_v58 }
 0x177   : > { %v1279_v34 = vadd.f32 %v1278_v52, %v1277_v63 }
 0x179   : > { %v1281_v24 = vadd.f32 %v1280_v17, %v1279_v34  ;;  %v1390_v17 = vld [vmem:[%s3660_s6] sm:$0xff] }
 0x17a   : > { %2406 = vmatpush3.msra.mxu1 %v1390_v17  ;;  %v1315_v34 = vld [vmem:[%s3659_s5] sm:$0x1]  ;;  %v2252_v17 = vld [vmem:[%s2665_s12 + $0x30] sm:$0xff] }
 0x17b   : > { %v1283_v50 = vadd.f32 %v1282_v25, %v1281_v24 }
 0x17d   : > { %v1285_v48 = vadd.f32 %v1284_v10, %v1283_v50 }
 0x17f   : > { %v1287_v6 = vadd.f32 %v1286_v55, %v1285_v48  ;;  %v1509_v55 = vld [vmem:[%s3662_s8 + $0x18] sm:$0xff]  ;;  %v1508_v48 = vld [vmem:[%s3662_s8 + $0x10] sm:$0xff] }
 0x180   : > { %2410 = vmatprep.subr.mxu0 %v1509_v55  ;;  %2470 = vmatprep.subr.mxu1 %v1509_v55 }
 0x181   : > { %v1289_v39 = vadd.f32 %v1288_v22, %v1287_v6  ;;  %v1507_v22 = vld [vmem:[%s3662_s8 + $0x8] sm:$0xff]  ;;  %v1506_v6 = vld [vmem:[%s3662_s8] sm:$0xff] }
 0x183   : > { %v1291_v36 = vadd.f32 %v1290_v0, %v1289_v39  ;;  %v1391_v0 = vld [vmem:[%s3661_s7] sm:$0x1] }
 0x185   : > { %v1293_v14 = vadd.f32 %v1292_v62, %v1291_v36 }
 0x187   : > { %v1295_v37 = vadd.f32 %v1294_v35, %v1293_v14 }
 0x189   : > { %v1297_v18 = vadd.f32 %v1296_v42, %v1295_v37 }
 0x18b   : > { %v1299_v26 = vadd.f32 %v1298_v13, %v1297_v18  ;;  %v3706_v13 = vld [vmem:[#allocation3_spill] sm:$0xff] }
 0x18c   : > { %v3707_v18 = vsub.s32 0, %v3706_v13 }
 0x18d   : > { %v1301_v59 = vadd.f32 %v1300_v8, %v1299_v26 }
 0x18f   : > { %v1303_v28 = vadd.f32 %v1302_v21, %v1301_v59 }
 0x191   : > { %v1304_v16 = vrot.slane %v1303_v28, 4 }
 0x193   : > { %v1305_v3 = vadd.f32 %v1304_v16, %v1303_v28 }
 0x195   : > { %v1306_v56 = vrot.slane %v1305_v3, 2 }
 0x197   : > { %v1307_v1 = vadd.f32 %v1306_v56, %v1305_v3  ;;  %v2272_v56 = vld [vmem:[%s2665_s12 + $0xd0] sm:$0xff] }
 0x199   : > { %v1308_v58 = vrot.slane %v1307_v1, 1 }
 0x19b   : > { %v1309_v52 = vadd.f32 %v1308_v58, %v1307_v1  ;;  %v2249_v1 = vld [vmem:[%s2665_s12 + $0x18] sm:$0xff] }
 0x19c   : > { %v2253_v58 = vld [vmem:[%s2665_s12 + $0x38] sm:$0xff] }
 0x19d   : > { %v1310_v63 = vmul.f32 0.00390625, %v1309_v52  ;;  %v2254_v52 = vld [vmem:[%s2665_s12 + $0x40] sm:$0xff] }
 0x19f   : > { %2403 = vmatmul.mubr.msk.f32.vlgmr.msra.gmra.mxu0 %vm1196_vm4, %v1310_v63  ;;  %v2274_v63 = vld [vmem:[%s2665_s12 + $0xe0] sm:$0xff] }
 0x1a0   : > { %2411 = vmatpush3.msra.mxu0 %v1509_v55 }
 0x1a1   : > { %2412 = vmatprep.subr.mxu0 %v1508_v48 }
 0x1a2   : > { %2413 = vmatpush3.msra.mxu0 %v1508_v48 }
 0x1a3   : > { %2414 = vmatprep.subr.mxu0 %v1507_v22 }
 0x1a4   : > { %2415 = vmatpush3.msra.mxu0 %v1507_v22 }
 0x1a5   : > { %2416 = vmatprep.subr.mxu0 %v1506_v6 }
 0x1a6   : > { %2417 = vmatpush3.msra.mxu0 %v1506_v6 }
 0x25f   : > { %v1385_v25 = vpop.f32.mrf.mxu0 }
 0x260   : > { %v1386_v24 = vadd.f32 %v1385_v25, %v1315_v34 }
 0x261   : > { %v2404_v10 = vpop.f32.mrf.mxu0 }
 0x262   : > { %v1389_v50 = vmax.f32 %v1386_v24, 0.0  ;;  %v2273_v24 = vld [vmem:[%s2665_s12 + $0xd8] sm:$0xff]  ;;  %v1973_v10 = vrot.slane %v2272_v56, 1 }
 0x264   : > { %2408 = vmatmul.mubr.msk.f32.vlgmr.msra.gmra.mxu1 %vm1392_vm6, %v1389_v50  ;;  %v1935_v50 = vrot.slane %v2249_v1, 1 }
 0x265   : > { %2474 = vmatpush3.msra.mxu1 %v1509_v55 }
 0x266   : > { %2471 = vmatprep.subr.mxu1 %v1508_v48 }
 0x267   : > { %2475 = vmatpush3.msra.mxu1 %v1508_v48  ;;  %v1941_v48 = vrot.slane %v2253_v58, 1 }
 0x268   : > { %2472 = vmatprep.subr.mxu1 %v1507_v22 }
 0x269   : > { %2476 = vmatpush3.msra.mxu1 %v1507_v22  ;;  %v1943_v22 = vrot.slane %v2254_v52, 1 }
 0x26a   : > { %2473 = vmatprep.subr.mxu1 %v1506_v6 }
 0x26b   : > { %2477 = vmatpush3.msra.mxu1 %v1506_v6  ;;  %v1976_v6 = vrot.slane %v2274_v63, 1 }
 0x324   : > { %v1462_v39 = vpop.f32.mrf.mxu1 }
 0x325   : > { %v1463_v62 = vadd.f32 %v1462_v39, %v1391_v0  ;;  %v1940_v39 = vrot.slane %v2252_v17, 1 }
 0x326   : > { %v2409_v36 = vpop.f32.mrf.mxu1 }
 0x327   : > { %v1466_v35 = vadd.f32 3.0, %v1463_v62  ;;  %v1975_v62 = vrot.slane %v2273_v24, 1  ;;  %v3450_v36 = vld [vmem:[%s2665_s12 + $0x50] sm:$0xff] }
 0x329   : > { %v1467_v14 = vmax.f32 %v1466_v35, 0.0  ;;  %v3455_v35 = vld [vmem:[%s3663_s9] ss:$0 sm:$0xff] }
 0x32b   : > { %v1468_v42 = vmin.f32 %v1467_v14, 6.0  ;;  %v2257_v14 = vld [vmem:[%s2665_s12 + $0x58] sm:$0xff] }
 0x32d   : > { %v1469_v37 = vmul.f32 0.16666667, %v1468_v42  ;;  %v3459_v42 = vld [vmem:[%s2665_s12 + $0xf8] sm:$0xff] }
 0x32f   : > { %v3339_v8 = vrot.slane %v1469_v37, %v3707_v18 }
 0x331   : > { %v1474_v26 = vmul.f32 %v3339_v8, %v3180_v60  ;;  %v1488_v21 = vmul.f32 %v3339_v8, %v3240_v5  ;;  %v1475_v59 = vmul.f32 %v3339_v8, %v3182_v9  ;;  %v1489_v28 = vmul.f32 %v3339_v8, %v3244_v7 }
 0x332   : > { %v1476_v16 = vmul.f32 %v3339_v8, %v3184_v47  ;;  %v1490_v3 = vmul.f32 %v3339_v8, %v3248_v20  ;;  %v1477_v60 = vmul.f32 %v3339_v8, %v3186_v15  ;;  %v1491_v9 = vmul.f32 %v3339_v8, %v3252_v32 }
 0x333   : > { %2418 = vmatprep.mubr.msk.f32.mxu0 %vm1196_vm4, %v1474_v26  ;;  %2439 = vmatprep.mubr.msk.f32.mxu1 %vm1196_vm4, %v1488_v21  ;;  %v1478_v47 = vmul.f32 %v3339_v8, %v3195_v43  ;;  %v1492_v5 = vmul.f32 %v3339_v8, %v3256_v12  ;;  %v1479_v15 = vmul.f32 %v3339_v8, %v3204_v61  ;;  %v2278_v26 = vld [vmem:[%s2665_s12 + $0x100] sm:$0xff]  ;;  %v2255_v21 = vld [vmem:[%s2665_s12 + $0x48] sm:$0xff] }
 0x334   : > { %2419 = vmatmul.mubr.msk.f32.vlgmr.msra.gmra.mxu0 %vm1196_vm4, %v1475_v59  ;;  %2440 = vmatmul.mubr.msk.f32.vlgmr.msra.gmra.mxu1 %vm1196_vm4, %v1489_v28  ;;  %v1493_v7 = vmul.f32 %v3339_v8, %v3260_v31  ;;  %v1480_v43 = vmul.f32 %v3339_v8, %v3208_v51  ;;  %v1494_v20 = vmul.f32 %v3339_v8, %v3264_v33  ;;  %v2276_v59 = vld [vmem:[%s2665_s12 + $0xf0] sm:$0xff] }
 0x335   : > { %2421 = vmatprep.mubr.msk.f32.mxu0 %vm1196_vm4, %v1476_v16  ;;  %2442 = vmatprep.mubr.msk.f32.mxu1 %vm1196_vm4, %v1490_v3  ;;  %v1481_v61 = vmul.f32 %v3339_v8, %v3212_v2  ;;  %v1495_v32 = vmul.f32 %v3339_v8, %v3268_v41  ;;  %v1482_v51 = vmul.f32 %v3339_v8, %v3216_v29 }
 0x336   : > { %v1496_v12 = vmul.f32 %v3339_v8, %v3272_v19  ;;  %v1483_v2 = vmul.f32 %v3339_v8, %v3220_v30  ;;  %v1497_v31 = vmul.f32 %v3339_v8, %v3276_v40  ;;  %v1484_v29 = vmul.f32 %v3339_v8, %v3224_v49 }
 0x337   : > { %v1498_v33 = vmul.f32 %v3339_v8, %v3280_v4  ;;  %v1485_v30 = vmul.f32 %v3339_v8, %v3228_v11  ;;  %v1499_v41 = vmul.f32 %v3339_v8, %v3284_v45  ;;  %v1486_v49 = vmul.f32 %v3339_v8, %v3232_v54 }
 0x338   : > { %2422 = vmatmul.mubr.msk.f32.gmra.mxu0 %vm1196_vm4, %v1477_v60  ;;  %2443 = vmatmul.mubr.msk.f32.gmra.mxu1 %vm1196_vm4, %v1491_v9  ;;  %v1500_v19 = vmul.f32 %v3339_v8, %v3288_v23  ;;  %v1487_v11 = vmul.f32 %v3339_v8, %v3236_v27  ;;  %v1501_v54 = vmul.f32 %v3339_v8, %v3292_v46  ;;  %v2250_v23 = vld [vmem:[%s2665_s12 + $0x20] sm:$0xff]  ;;  %v2251_v46 = vld [vmem:[%s2665_s12 + $0x28] sm:$0xff] }
 0x339   : > { %2424 = vmatprep.mubr.msk.f32.mxu0 %vm1196_vm4, %v1478_v47  ;;  %2445 = vmatprep.mubr.msk.f32.mxu1 %vm1196_vm4, %v1492_v5  ;;  %v1502_v40 = vmul.f32 %v3339_v8, %v3296_v38  ;;  %v1503_v27 = vmul.f32 %v3339_v8, %v3300_v44  ;;  %v1504_v4 = vmul.f32 %v3339_v8, %v3304_v57  ;;  %v2271_v38 = vld [vmem:[%s2665_s12 + $0xc8] sm:$0xff]  ;;  %v2270_v44 = vld [vmem:[%s2665_s12 + $0xc0] sm:$0xff]  ;;  %v1936_v34 = vrot.slane %v2250_v23, 1 }
 0x33a   : > { %v1505_v45 = vmul.f32 %v3339_v8, %v3308_v53  ;;  %v2275_v57 = vld [vmem:[%s2665_s12 + $0xe8] sm:$0xff]  ;;  %v1938_v25 = vrot.slane %v2251_v46, 1  ;;  %v1971_v53 = vrot.slane %v2271_v38, 1  ;;  %v1970_v55 = vrot.slane %v2270_v44, 1 }
 0x33b   : > { %v1978_v0 = vrot.slane %v2275_v57, 1  ;;  %v1937_v18 = vsel %vm781_vm2, %v1935_v50, %v1936_v34  ;;  %v1944_v3 = vsel %vm781_vm2, %v1941_v48, %v1943_v22  ;;  %v1942_v9 = vsel %vm781_vm2, %v1940_v39, %v1941_v48  ;;  %v3473_v5 = vld [vmem:[%s2665_s12 + $0x68] sm:$0xff] }
 0x33c   : > { %2425 = vmatmul.mubr.msk.f32.gmra.mxu0 %vm1196_vm4, %v1479_v15  ;;  %2446 = vmatmul.mubr.msk.f32.gmra.mxu1 %vm1196_vm4, %v1493_v7  ;;  %v1939_v37 = vsel %vm781_vm2, %v1936_v34, %v1938_v25  ;;  %v1974_v13 = vsel %vm781_vm2, %v1971_v53, %v1973_v10  ;;  %v1972_v8 = vsel %vm781_vm2, %v1970_v55, %v1971_v53  ;;  %v1946_v47 = vrot.slane %v3450_v36, 1  ;;  %v3502_v55 = vld [vmem:[%s2665_s12 + $0x80] sm:$0xff]  ;;  %v2263_v48 = vld [vmem:[%s2665_s12 + $0x88] sm:$0xff] }
 0x33d   : > { %2427 = vmatprep.mubr.msk.f32.mxu0 %vm1196_vm4, %v1480_v43  ;;  %2448 = vmatprep.mubr.msk.f32.mxu1 %vm1196_vm4, %v1494_v20  ;;  %v1979_v60 = vsel %vm781_vm2, %v1976_v6, %v1978_v0  ;;  %v1977_v43 = vsel %vm781_vm2, %v1975_v62, %v1976_v6  ;;  %v1948_v20 = vrot.slane %v2257_v14, 1  ;;  %v2283_v14 = vld [vmem:[%s2665_s12 + $0x128] sm:$0xff] }
 0x33f   : > { %v1949_v57 = vsel %vm781_vm2, %v1946_v47, %v1948_v20  ;;  %v2266_v20 = vld [vmem:[%s2665_s12 + $0xa0] sm:$0xff] }
 0x340   : > { %2428 = vmatmul.mubr.msk.f32.gmra.mxu0 %vm1196_vm4, %v1481_v61  ;;  %2449 = vmatmul.mubr.msk.f32.gmra.mxu1 %vm1196_vm4, %v1495_v32  ;;  %v2260_v61 = vld [vmem:[%s2665_s12 + $0x70] sm:$0xff] }
 0x341   : > { %2430 = vmatprep.mubr.msk.f32.mxu0 %vm1196_vm4, %v1482_v51  ;;  %2451 = vmatprep.mubr.msk.f32.mxu1 %vm1196_vm4, %v1496_v12  ;;  %v2280_v32 = vld [vmem:[%s2665_s12 + $0x110] sm:$0xff]  ;;  %v2281_v51 = vld [vmem:[%s2665_s12 + $0x118] sm:$0xff]  ;;  %v1953_v23 = vrot.slane %v2260_v61, 1  ;;  %v3533_v61 = vld [vmem:[%s2665_s12 + $0x140] sm:$0xff] }
 0x342   : > { %v1986_v46 = vrot.slane %v2280_v32, 1  ;;  %v1988_v38 = vrot.slane %v2281_v51, 1  ;;  %v2287_v32 = vld [vmem:[%s2665_s12 + $0x148] sm:$0xff] }
 0x344   : > { %2431 = vmatmul.mubr.msk.f32.gmra.mxu0 %vm1196_vm4, %v1483_v2  ;;  %2452 = vmatmul.mubr.msk.f32.gmra.mxu1 %vm1196_vm4, %v1497_v31  ;;  %v1981_v31 = vrot.slane %v3459_v42, 1  ;;  %v1989_v36 = vsel %vm781_vm2, %v1986_v46, %v1988_v38 }
 0x345   : > { %2433 = vmatprep.mubr.msk.f32.mxu0 %vm1196_vm4, %v1484_v29  ;;  %2454 = vmatprep.mubr.msk.f32.mxu1 %vm1196_vm4, %v1498_v33  ;;  %v1983_v29 = vrot.slane %v2278_v26, 1  ;;  %v1945_v33 = vrot.slane %v2255_v21, 1  ;;  %v2261_v26 = vld [vmem:[%s2665_s12 + $0x78] sm:$0xff]  ;;  %v2282_v21 = vld [vmem:[%s2665_s12 + $0x120] sm:$0xff] }
 0x347   : > { %v1984_v17 = vsel %vm781_vm2, %v1981_v31, %v1983_v29  ;;  %v1947_v0 = vsel %vm781_vm2, %v1945_v33, %v1946_v47  ;;  %v3523_v47 = vld [vmem:[%s2665_s12 + $0x98] sm:$0xff]  ;;  %v1955_v29 = vrot.slane %v2261_v26, 1  ;;  %v1990_v33 = vrot.slane %v2282_v21, 1  ;;  %v2288_v26 = vld [vmem:[%s2665_s12 + $0x150] sm:$0xff] }
 0x348   : > { %2434 = vmatmul.mubr.msk.f32.gmra.mxu0 %vm1196_vm4, %v1485_v30  ;;  %2455 = vmatmul.mubr.msk.f32.gmra.mxu1 %vm1196_vm4, %v1499_v41  ;;  %v1980_v30 = vrot.slane %v2276_v59, 1 }
 0x349   : > { %2436 = vmatprep.mubr.msk.f32.mxu0 %vm1196_vm4, %v1486_v49  ;;  %2457 = vmatprep.mubr.msk.f32.mxu1 %vm1196_vm4, %v1500_v19 }
 0x34a   : > { %v1982_v39 = vsel %vm781_vm2, %v1980_v30, %v1981_v31 }
 0x34c   : > { %2437 = vmatmul.mubr.msk.f32.gmra.mxu0 %vm1196_vm4, %v1487_v11  ;;  %2458 = vmatmul.mubr.msk.f32.gmra.mxu1 %vm1196_vm4, %v1501_v54  ;;  %v2258_v54 = vld [vmem:[%s2665_s12 + $0x60] sm:$0xff] }
 0x34d   : > { %2460 = vmatprep.mubr.msk.f32.mxu1 %vm1196_vm4, %v1502_v40  ;;  %v2279_v40 = vld [vmem:[%s2665_s12 + $0x108] sm:$0xff]  ;;  %v1950_v34 = vrot.slane %v2258_v54, 1 }
 0x34e   : > { %v1985_v25 = vrot.slane %v2279_v40, 1  ;;  %v1961_v40 = vrot.slane %v3523_v47, 1 }
 0x350   : > { %2461 = vmatmul.mubr.msk.f32.gmra.mxu1 %vm1196_vm4, %v1503_v27 }
 0x351   : > { %2463 = vmatprep.mubr.msk.f32.mxu1 %vm1196_vm4, %v1504_v4 }
 0x354   : > { %2464 = vmatmul.mubr.msk.f32.gmra.mxu1 %vm1196_vm4, %v1505_v45  ;;  %v1951_v45 = vrot.slane %v3473_v5, 1 }
 0x356   : > { %v1954_v62 = vsel %vm781_vm2, %v1951_v45, %v1953_v23 }
 0x3f4   : > { %v2420_v28 = vpop.f32.mrf.mxu0  ;;  %v2441_v16 = vpop.f32.mrf.mxu1 }
 0x3f5   : > { %v1685_v15 = vadd.f32 %v2420_v28, %v3455_v35  ;;  %v1755_v7 = vadd.f32 %v2441_v16, %v3455_v35  ;;  %v1952_v16 = vsel %vm781_vm2, %v1950_v34, %v1951_v45  ;;  %v1998_v45 = vrot.slane %v2287_v32, 1 }
 0x3f6   : > { %v1679_v12 = vpop.f32.mrf.mxu0  ;;  %v1749_v2 = vpop.f32.mrf.mxu1 }
 0x3f7   : > { %v2048_v41 = vadd.f32 %v1939_v37, %v1685_v15  ;;  %v2062_v49 = vadd.f32 %v1974_v13, %v1755_v7  ;;  %v1680_v19 = vadd.f32 %v3455_v35, %v1679_v12  ;;  %v1750_v11 = vadd.f32 %v3455_v35, %v1749_v2 }
 0x3f8   : > { %v2423_v27 = vpop.f32.mrf.mxu0  ;;  %v2444_v4 = vpop.f32.mrf.mxu1  ;;  %v1991_v2 = vrot.slane %v2283_v14, 1 }
 0x3f9   : > { %2080 = vst.msk [vmem:[%s2660_s29 + $0x8] sm:$0xff] %vm1392_vm6, %v2048_v41  ;;  %2094 = vst.msk [vmem:[%s2660_s29 + $0x78] sm:$0xff] %vm1392_vm6, %v2062_v49  ;;  %v2047_v56 = vadd.f32 %v1937_v18, %v1680_v19  ;;  %v2061_v1 = vadd.f32 %v1972_v8, %v1750_v11  ;;  %v1695_v44 = vadd.f32 %v2423_v27, %v3455_v35  ;;  %v2284_v8 = vld [vmem:[%s2665_s12 + $0x130] sm:$0xff]  ;;  %v1963_v27 = vrot.slane %v2266_v20, 1 }
 0x3fa   : > { %v1765_v58 = vadd.f32 %v2444_v4, %v3455_v35  ;;  %v1689_v52 = vpop.f32.mrf.mxu0  ;;  %v1759_v63 = vpop.f32.mrf.mxu1  ;;  %v1993_v31 = vrot.slane %v2284_v8, 1  ;;  %v1996_v4 = vrot.slane %v3533_v61, 1  ;;  %v1992_v34 = vsel %vm781_vm2, %v1990_v33, %v1991_v2  ;;  %v2267_v8 = vld [vmem:[%s2665_s12 + $0xa8] sm:$0xff] }
 0x3fb   : > { %2079 = vst.msk [vmem:[%s2660_s29] sm:$0xff] %vm1392_vm6, %v2047_v56  ;;  %2093 = vst.msk [vmem:[%s2660_s29 + $0x70] sm:$0xff] %vm1392_vm6, %v2061_v1  ;;  %v2050_v53 = vadd.f32 %v1944_v3, %v1695_v44  ;;  %v1690_v10 = vadd.f32 %v3455_v35, %v1689_v52  ;;  %v1760_v50 = vadd.f32 %v3455_v35, %v1759_v63  ;;  %v2264_v1 = vld [vmem:[%s2665_s12 + $0x90] sm:$0xff]  ;;  %v2285_v44 = vld [vmem:[%s2665_s12 + $0x138] sm:$0xff] }
 0x3fc   : > { %v2064_v24 = vadd.f32 %v1979_v60, %v1765_v58  ;;  %v2426_v22 = vpop.f32.mrf.mxu0  ;;  %v2447_v6 = vpop.f32.mrf.mxu1  ;;  %v1987_v3 = vsel %vm781_vm2, %v1985_v25, %v1986_v46  ;;  %v1956_v60 = vrot.slane %v3502_v55, 1  ;;  %v3557_v25 = vld [vmem:[%s2665_s12 + $0xb0] sm:$0xff]  ;;  %v2269_v55 = vld [vmem:[%s2665_s12 + $0xb8] sm:$0xff]  ;;  %v1995_v14 = vrot.slane %v2285_v44, 1 }
 0x3fd   : > { %2082 = vst.msk [vmem:[%s2660_s29 + $0x18] sm:$0xff] %vm1392_vm6, %v2050_v53  ;;  %v2049_v42 = vadd.f32 %v1942_v9, %v1690_v10  ;;  %v2063_v37 = vadd.f32 %v1977_v43, %v1760_v50  ;;  %v1705_v13 = vadd.f32 %v2426_v22, %v3455_v35  ;;  %v1775_v18 = vadd.f32 %v2447_v6, %v3455_v35  ;;  %v2290_v22 = vld [vmem:[%s2665_s12 + $0x160] sm:$0xff] }
 0x3fe   : > { %2096 = vst.msk [vmem:[%s2660_s29 + $0x88] sm:$0xff] %vm1392_vm6, %v2064_v24  ;;  %v1699_v59 = vpop.f32.mrf.mxu0  ;;  %v1769_v28 = vpop.f32.mrf.mxu1  ;;  %v1958_v9 = vrot.slane %v2263_v48, 1  ;;  %v2289_v48 = vld [vmem:[%s2665_s12 + $0x158] sm:$0xff] }
 0x3ff   : > { %2081 = vst.msk [vmem:[%s2660_s29 + $0x10] sm:$0xff] %vm1392_vm6, %v2049_v42  ;;  %2095 = vst.msk [vmem:[%s2660_s29 + $0x80] sm:$0xff] %vm1392_vm6, %v2063_v37  ;;  %v2052_v5 = vadd.f32 %v1949_v57, %v1705_v13  ;;  %v2066_v15 = vadd.f32 %v1984_v17, %v1775_v18  ;;  %v1700_v7 = vadd.f32 %v3455_v35, %v1699_v59 }
 0x400   : > { %v1770_v43 = vadd.f32 %v3455_v35, %v1769_v28  ;;  %v2429_v51 = vpop.f32.mrf.mxu0  ;;  %v2450_v12 = vpop.f32.mrf.mxu1  ;;  %v1959_v52 = vsel %vm781_vm2, %v1956_v60, %v1958_v9  ;;  %v1994_v57 = vsel %vm781_vm2, %v1991_v2, %v1993_v31  ;;  %v1957_v17 = vsel %vm781_vm2, %v1955_v29, %v1956_v60 }
 0x401   : > { %2084 = vst.msk [vmem:[%s2660_s29 + $0x28] sm:$0xff] %vm1392_vm6, %v2052_v5  ;;  %2098 = vst.msk [vmem:[%s2660_s29 + $0x98] sm:$0xff] %vm1392_vm6, %v2066_v15  ;;  %v2051_v30 = vadd.f32 %v1947_v0, %v1700_v7  ;;  %v1715_v49 = vadd.f32 %v2429_v51, %v3455_v35  ;;  %v1785_v19 = vadd.f32 %v2450_v12, %v3455_v35  ;;  %v1966_v28 = vrot.slane %v3557_v25, 1  ;;  %v2292_v7 = vld [vmem:[%s2665_s12 + $0x170] sm:$0xff] }
 0x402   : > { %v2065_v41 = vadd.f32 %v1982_v39, %v1770_v43  ;;  %v1709_v11 = vpop.f32.mrf.mxu0  ;;  %v1779_v54 = vpop.f32.mrf.mxu1  ;;  %v1964_v39 = vsel %vm781_vm2, %v1961_v40, %v1963_v27  ;;  %v2003_v60 = vrot.slane %v2290_v22, 1  ;;  %v2293_v43 = vld [vmem:[%s2665_s12 + $0x178] sm:$0xff]  ;;  %v1997_v51 = vsel %vm781_vm2, %v1995_v14, %v1996_v4 }
 0x403   : > { %2083 = vst.msk [vmem:[%s2660_s29 + $0x20] sm:$0xff] %vm1392_vm6, %v2051_v30  ;;  %v2054_v23 = vadd.f32 %v1954_v62, %v1715_v49  ;;  %v2068_v46 = vadd.f32 %v1989_v36, %v1785_v19  ;;  %v1710_v38 = vadd.f32 %v3455_v35, %v1709_v11  ;;  %v1780_v56 = vadd.f32 %v3455_v35, %v1779_v54 }
 0x404   : > { %2097 = vst.msk [vmem:[%s2660_s29 + $0x90] sm:$0xff] %vm1392_vm6, %v2065_v41  ;;  %v2432_v58 = vpop.f32.mrf.mxu0  ;;  %v2453_v63 = vpop.f32.mrf.mxu1  ;;  %v1999_v62 = vsel %vm781_vm2, %v1996_v4, %v1998_v45  ;;  %v1960_v36 = vrot.slane %v2264_v1, 1  ;;  %v1965_v12 = vrot.slane %v2267_v8, 1  ;;  %v2000_v2 = vrot.slane %v2288_v26, 1  ;;  %v2291_v41 = vld [vmem:[%s2665_s12 + $0x168] sm:$0xff] }
 0x405   : > { %2086 = vst.msk [vmem:[%s2660_s29 + $0x38] sm:$0xff] %vm1392_vm6, %v2054_v23  ;;  %2100 = vst.msk [vmem:[%s2660_s29 + $0xa8] sm:$0xff] %vm1392_vm6, %v2068_v46  ;;  %v2053_v53 = vadd.f32 %v1952_v16, %v1710_v38  ;;  %v2067_v24 = vadd.f32 %v1987_v3, %v1780_v56  ;;  %v1725_v10 = vadd.f32 %v2432_v58, %v3455_v35  ;;  %v1968_v16 = vrot.slane %v2269_v55, 1  ;;  %v2295_v38 = vld [vmem:[%s2665_s12 + $0x188] sm:$0xff]  ;;  %v2296_v56 = vld [vmem:[%s2665_s12 + $0x190] sm:$0xff] }
 0x406   : > { %v1795_v50 = vadd.f32 %v2453_v63, %v3455_v35  ;;  %v1719_v6 = vpop.f32.mrf.mxu0  ;;  %v1789_v0 = vpop.f32.mrf.mxu1  ;;  %v2001_v3 = vrot.slane %v2289_v48, 1  ;;  %v1962_v61 = vsel %vm781_vm2, %v1960_v36, %v1961_v40  ;;  %v2006_v40 = vrot.slane %v2292_v7, 1 }
 0x407   : > { %2085 = vst.msk [vmem:[%s2660_s29 + $0x30] sm:$0xff] %vm1392_vm6, %v2053_v53  ;;  %2099 = vst.msk [vmem:[%s2660_s29 + $0xa0] sm:$0xff] %vm1392_vm6, %v2067_v24  ;;  %v2056_v42 = vadd.f32 %v1959_v52, %v1725_v10  ;;  %v1720_v13 = vadd.f32 %v3455_v35, %v1719_v6  ;;  %v1790_v18 = vadd.f32 %v3455_v35, %v1789_v0  ;;  %v2008_v27 = vrot.slane %v2293_v43, 1  ;;  %v2294_v53 = vld [vmem:[%s2665_s12 + $0x180] sm:$0xff] }
 0x408   : > { %v2070_v37 = vadd.f32 %v1994_v57, %v1795_v50  ;;  %v2435_v21 = vpop.f32.mrf.mxu0  ;;  %v2456_v59 = vpop.f32.mrf.mxu1  ;;  %v1969_v19 = vsel %vm781_vm2, %v1966_v28, %v1968_v16  ;;  %v2004_v54 = vsel %vm781_vm2, %v2001_v3, %v2003_v60  ;;  %v1967_v44 = vsel %vm781_vm2, %v1965_v12, %v1966_v28 }
 0x409   : > { %2088 = vst.msk [vmem:[%s2660_s29 + $0x48] sm:$0xff] %vm1392_vm6, %v2056_v42  ;;  %v2055_v9 = vadd.f32 %v1957_v17, %v1720_v13  ;;  %v2069_v47 = vadd.f32 %v1992_v34, %v1790_v18  ;;  %v1735_v5 = vadd.f32 %v2435_v21, %v3455_v35  ;;  %v1805_v15 = vadd.f32 %v2456_v59, %v3455_v35 }
 0x40a   : > { %2102 = vst.msk [vmem:[%s2660_s29 + $0xb8] sm:$0xff] %vm1392_vm6, %v2070_v37  ;;  %v1729_v20 = vpop.f32.mrf.mxu0  ;;  %v1799_v32 = vpop.f32.mrf.mxu1  ;;  %v2002_v52 = vsel %vm781_vm2, %v2000_v2, %v2001_v3  ;;  %v2005_v63 = vrot.slane %v2291_v41, 1  ;;  %v2009_v10 = vsel %vm781_vm2, %v2006_v40, %v2008_v27  ;;  %v2011_v50 = vrot.slane %v2295_v38, 1 }
 0x40b   : > { %2087 = vst.msk [vmem:[%s2660_s29 + $0x40] sm:$0xff] %vm1392_vm6, %v2055_v9  ;;  %2101 = vst.msk [vmem:[%s2660_s29 + $0xb0] sm:$0xff] %vm1392_vm6, %v2069_v47  ;;  %v2058_v31 = vadd.f32 %v1964_v39, %v1735_v5  ;;  %v2072_v29 = vadd.f32 %v1999_v62, %v1805_v15  ;;  %v1730_v33 = vadd.f32 %v3455_v35, %v1729_v20  ;;  %v2013_v55 = vrot.slane %v2296_v56, 1 }
 0x40c   : > { %v1800_v30 = vadd.f32 %v3455_v35, %v1799_v32  ;;  %v2438_v49 = vpop.f32.mrf.mxu0  ;;  %v2459_v11 = vpop.f32.mrf.mxu1  ;;  %v2007_v39 = vsel %vm781_vm2, %v2005_v63, %v2006_v40  ;;  %v2010_v62 = vrot.slane %v2294_v53, 1 }
 0x40d   : > { %2090 = vst.msk [vmem:[%s2660_s29 + $0x58] sm:$0xff] %vm1392_vm6, %v2058_v31  ;;  %2104 = vst.msk [vmem:[%s2660_s29 + $0xc8] sm:$0xff] %vm1392_vm6, %v2072_v29  ;;  %v2057_v4 = vadd.f32 %v1962_v61, %v1730_v33  ;;  %v1745_v23 = vadd.f32 %v2438_v49, %v3455_v35  ;;  %v1815_v46 = vadd.f32 %v2459_v11, %v3455_v35 }
 0x40e   : > { %v2071_v45 = vadd.f32 %v1997_v51, %v1800_v30  ;;  %v1739_v1 = vpop.f32.mrf.mxu0  ;;  %v1809_v58 = vpop.f32.mrf.mxu1  ;;  %v2014_v37 = vsel %vm781_vm2, %v2011_v50, %v2013_v55  ;;  %v2012_v26 = vsel %vm781_vm2, %v2010_v62, %v2011_v50 }
 0x40f   : > { %2089 = vst.msk [vmem:[%s2660_s29 + $0x50] sm:$0xff] %vm1392_vm6, %v2057_v4  ;;  %v2060_v57 = vadd.f32 %v1969_v19, %v1745_v23  ;;  %v2074_v17 = vadd.f32 %v2004_v54, %v1815_v46  ;;  %v1740_v34 = vadd.f32 %v3455_v35, %v1739_v1  ;;  %v1810_v25 = vadd.f32 %v3455_v35, %v1809_v58 }
 0x410   : > { %2103 = vst.msk [vmem:[%s2660_s29 + $0xc0] sm:$0xff] %vm1392_vm6, %v2071_v45  ;;  %v2462_v24 = vpop.f32.mrf.mxu1 }
 0x411   : > { %2092 = vst.msk [vmem:[%s2660_s29 + $0x68] sm:$0xff] %vm1392_vm6, %v2060_v57  ;;  %2106 = vst.msk [vmem:[%s2660_s29 + $0xd8] sm:$0xff] %vm1392_vm6, %v2074_v17  ;;  %v2059_v48 = vadd.f32 %v1967_v44, %v1740_v34  ;;  %v2073_v22 = vadd.f32 %v2002_v52, %v1810_v25  ;;  %v1825_v6 = vadd.f32 %v2462_v24, %v3455_v35 }
 0x412   : > { %v1819_v0 = vpop.f32.mrf.mxu1 }
 0x413   : > { %2091 = vst.msk [vmem:[%s2660_s29 + $0x60] sm:$0xff] %vm1392_vm6, %v2059_v48  ;;  %2105 = vst.msk [vmem:[%s2660_s29 + $0xd0] sm:$0xff] %vm1392_vm6, %v2073_v22  ;;  %v2076_v36 = vadd.f32 %v2009_v10, %v1825_v6  ;;  %v1820_v14 = vadd.f32 %v3455_v35, %v1819_v0 }
 0x414   : > { %v2465_v42 = vpop.f32.mrf.mxu1 }
 0x415   : > { %2108 = vst.msk [vmem:[%s2660_s29 + $0xe8] sm:$0xff] %vm1392_vm6, %v2076_v36  ;;  %v2075_v13 = vadd.f32 %v2007_v39, %v1820_v14  ;;  %v1835_v18 = vadd.f32 %v2465_v42, %v3455_v35 }
 0x416   : > { %v1829_v8 = vpop.f32.mrf.mxu1 }
 0x417   : > { %2107 = vst.msk [vmem:[%s2660_s29 + $0xe0] sm:$0xff] %vm1392_vm6, %v2075_v13  ;;  %v2078_v21 = vadd.f32 %v2014_v37, %v1835_v18  ;;  %v1830_v59 = vadd.f32 %v3455_v35, %v1829_v8 }
 0x419   : > { %2110 = vst.msk [vmem:[%s2660_s29 + $0xf8] sm:$0xff] %vm1392_vm6, %v2078_v21  ;;  %v2077_v28 = vadd.f32 %v2012_v26, %v1830_v59 }
 0x41b   : > { %2109 = vst.msk [vmem:[%s2660_s29 + $0xf0] sm:$0xff] %vm1392_vm6, %v2077_v28 }
 0x41c PF: > { %s20_s17 = sadd.s32 1, %s2559_s17   ;;  %s3708_s13 = smov %s2551_s15 }
 0x41d   : > { %p17_p7 = scmp.ge.s32.totalorder %s20_s17, 10   ;;  %s3709_s14 = smov %s2555_s16 }
 0x41e   : > { %s3710_s15 = smov %s3713_s18  ;;  %s3711_s16 = smov %s3717_s19 }
 0x41f   :  { %19 = sbr.rel (!%p17_p7) target bundleno = 3 (0x3), region = 97 }

</bundles_post_ra>
